<compile_context>
chip_gen: v7x
topology: tpu7x:2x2x1
jax: 0.10.0
libtpu: 0.0.40
codegen_flags: <defaults>
</compile_context>

<pallas_src>
import jax
import jax.numpy as jnp
from jax.experimental import pallas as pl
from jax.experimental.pallas import tpu as pltpu

FEAT_PAD = 1024   # 1000 backbone features padded to a lane/MXU-friendly width
NCLS_PAD = 128    # n_classes padded to one full lane width (unmasked stores)


def _round_up(x, m):
    return ((x + m - 1) // m) * m


def spatialnet_kernel(x_ref, wb_ref, wfc_ref, o_ref, feat_acc):
    """Grid = (feat split, M tiles over S*B rows, K tiles over D). K is the reduction axis."""
    k = pl.program_id(2)

    @pl.when(k == 0)
    def _init():
        feat_acc[...] = jnp.zeros_like(feat_acc)

    # Backbone stand-in: partial (tm, tk) x (tk, feat_slice), accumulated in f32.
    feat_acc[...] += jnp.dot(x_ref[...], wb_ref[...],
                             preferred_element_type=jnp.float32)

    @pl.when(k == pl.num_programs(2) - 1)
    def _finalize():
        # fc on this feature slice: (tm, feat_slice) x (feat_slice, ncls_pad).
        # Lane-dense (128-wide) unmasked store of the partial logits.
        o_ref[0] = jnp.dot(feat_acc[...].astype(wfc_ref.dtype), wfc_ref[...],
                           preferred_element_type=jnp.float32)


def prepare_spatialnet_params(wb, bb, wfc, bfc, *, tk=3072,
                              feat_pad=FEAT_PAD, ncls_pad=NCLS_PAD):
    """Pad/cast weights ONCE (cache the result; do not redo this per forward call)."""
    D, feat_dim = wb.shape
    n_classes = wfc.shape[1]

    tk_eff = min(tk, _round_up(D, 128))          # lane-aligned K tile, clamped for small D
    D_pad = _round_up(D, tk_eff)

    wb_p = jnp.zeros((D_pad, feat_pad), jnp.bfloat16).at[:D, :feat_dim].set(
        wb.astype(jnp.bfloat16))
    wfc_p = jnp.zeros((feat_pad, ncls_pad), jnp.bfloat16).at[:feat_dim, :n_classes].set(
        wfc.astype(jnp.bfloat16))

    # Segment-invariant bias path; exact because the stand-in backbone is linear:
    # (x@wb + bb)@wfc + bfc == x@wb@wfc + (bb@wfc + bfc).
    bias = bb @ wfc + bfc

    return dict(wb_p=wb_p, wfc_p=wfc_p, bias=bias, tk=tk_eff, D=D, D_pad=D_pad,
                feat_pad=feat_pad, ncls_pad=ncls_pad, n_classes=n_classes)


def spatial_net_forward(frames, params, *, tm=128, feat_splits=1,
                        vmem_limit_bytes=48 * 1024 * 1024):
    """frames: (B, C, S, H, W) float32, matching the PyTorch NCSHW convention.

    feat_splits: 1 on v5e/v6e (single TensorCore); 2 on v7x so each core streams
    half of wb's columns (leading "parallel" grid axis).
    """
    B, C, S, H, W = frames.shape
    D = C * H * W
    assert D == params["D"], "frames flattened dim must match prepared backbone weight"

    tk = params["tk"]
    D_pad = params["D_pad"]
    feat_pad = params["feat_pad"]
    ncls_pad = params["ncls_pad"]
    n_classes = params["n_classes"]
    assert feat_pad % feat_splits == 0 and (feat_pad // feat_splits) % 128 == 0
    feat_slice = feat_pad // feat_splits

    # Fold segments into the matmul M dimension: (S*B, D).
    # TODO(synk): layout plumbing -- supply (S*B, D) (or (S, B, C, H, W)) upstream of
    # the jitted forward to avoid this per-call HBM transpose+copy of the frames.
    M = S * B
    x = jnp.transpose(frames, (2, 0, 1, 3, 4)).reshape(M, D)

    tm_eff = min(tm, _round_up(M, 8))            # don't pad tiny M up to 128 rows
    M_pad = _round_up(M, tm_eff)

    x_p = jnp.zeros((M_pad, D_pad), jnp.bfloat16).at[:M, :D].set(x.astype(jnp.bfloat16))

    grid = (feat_splits, M_pad // tm_eff, D_pad // tk)

    flops = 2 * M_pad * D_pad * feat_pad + 2 * M_pad * feat_pad * ncls_pad
    bytes_accessed = (feat_splits * x_p.size * 2          # x re-streamed per feat split
                      + params["wb_p"].size * 2
                      + params["wfc_p"].size * 2
                      + feat_splits * M_pad * ncls_pad * 4)

    partials = pl.pallas_call(
        spatialnet_kernel,
        out_shape=jax.ShapeDtypeStruct((feat_splits, M_pad, ncls_pad), jnp.float32),
        grid_spec=pltpu.PrefetchScalarGridSpec(
            num_scalar_prefetch=0,
            grid=grid,
            in_specs=[
                # activations: re-fetched per feat split (tiny vs. the wb stream)
                pl.BlockSpec((tm_eff, tk), lambda f, i, k: (i, k)),
                # backbone weight: streamed over K, column slice per feat split
                pl.BlockSpec((tk, feat_slice), lambda f, i, k: (k, f)),
                # fc weight: row slice per feat split, grid-invariant otherwise
                pl.BlockSpec((feat_slice, ncls_pad), lambda f, i, k: (f, 0)),
            ],
            out_specs=pl.BlockSpec((1, tm_eff, ncls_pad), lambda f, i, k: (f, i, 0)),
            scratch_shapes=[pltpu.VMEM((tm_eff, feat_slice), jnp.float32)],
        ),
        compiler_params=pltpu.CompilerParams(
            dimension_semantics=("parallel", "parallel", "arbitrary"),
            vmem_limit_bytes=vmem_limit_bytes,
        ),
        cost_estimate=pl.CostEstimate(flops=flops, transcendentals=0,
                                      bytes_accessed=bytes_accessed),
    )(x_p, params["wb_p"], params["wfc_p"])

    # Sum the feat-split partials (trivial), slice off padding, mean over segments,
    # add the hoisted segment-invariant bias.
    logits = jnp.sum(partials, axis=0)[:M, :n_classes].reshape(S, B, n_classes)
    return jnp.mean(logits, axis=0) + params["bias"][None, :]


if __name__ == "__main__":
    # Small shapes consistent with the module's forward:
    # B=2, C=3 (RGB), n_segments=3, H=W=16, n_classes=10, backbone feature dim=1000.
    B, C, S, H, W = 2, 3, 3, 16, 16
    n_classes = 10
    feat_dim = 1000
    D = C * H * W

    key = jax.random.PRNGKey(0)
    k_frames, k_wb, k_bb, k_wfc, k_bfc = jax.random.split(key, 5)

    frames = jax.random.normal(k_frames, (B, C, S, H, W), dtype=jnp.float32)
    wb = jax.random.normal(k_wb, (D, feat_dim), dtype=jnp.float32) * 0.02
    bb = jax.random.normal(k_bb, (feat_dim,), dtype=jnp.float32) * 0.02
    wfc = jax.random.normal(k_wfc, (feat_dim, n_classes), dtype=jnp.float32) * 0.02
    bfc = jax.random.normal(k_bfc, (n_classes,), dtype=jnp.float32) * 0.02

    # Weight prep is done once (hoisted out of the per-call forward).
    params = prepare_spatialnet_params(wb, bb, wfc, bfc, tk=3072)

    # Single-core path (v5e/v6e default).
    out = jax.block_until_ready(spatial_net_forward(frames, params, feat_splits=1))
    # Dual-core path (v7x: feature dim split across the two TensorCores).
    out2 = jax.block_until_ready(spatial_net_forward(frames, params, feat_splits=2))

    # Pure-JAX reference mirroring the kernel math (bf16 operands, f32 accumulation,
    # segment-invariant bias added after the mean).
    x2d = jnp.transpose(frames, (2, 0, 1, 3, 4)).reshape(S * B, D)
    feats = jnp.dot(x2d.astype(jnp.bfloat16), wb.astype(jnp.bfloat16),
                    preferred_element_type=jnp.float32)
    logits = jnp.dot(feats.astype(jnp.bfloat16), wfc.astype(jnp.bfloat16),
                     preferred_element_type=jnp.float32)
    ref = jnp.mean(logits.reshape(S, B, n_classes), axis=0) + (bb @ wfc + bfc)[None, :]

    assert out.shape == (B, n_classes)
    assert jnp.allclose(out, ref, atol=1e-2, rtol=1e-2), float(jnp.max(jnp.abs(out - ref)))
    assert jnp.allclose(out2, ref, atol=1e-2, rtol=1e-2), float(jnp.max(jnp.abs(out2 - ref)))

    print("KERNEL_OK")
</pallas_src>

<mosaic_0001>
module attributes {stable_mosaic.version = 11 : i64} {
  func.func @spatialnet_kernel(%arg0: i32, %arg1: i32, %arg2: i32, %arg3: memref<8x768xbf16, #tpu.memory_space<vmem>>, %arg4: memref<768x1024xbf16, #tpu.memory_space<vmem>>, %arg5: memref<1024x128xbf16, #tpu.memory_space<vmem>>, %arg6: memref<1x8x128xf32, #tpu.memory_space<vmem>>, %arg7: memref<8x1024xf32, #tpu.memory_space<vmem>>) attributes {dimension_semantics = [#tpu.dimension_semantics<parallel>, #tpu.dimension_semantics<parallel>, #tpu.dimension_semantics<arbitrary>], iteration_bounds = array<i64: 1, 1, 1>, scalar_prefetch = 0 : i64, scratch_operands = 1 : i64, tpu.core_type = #tpu.core_type<tc>, window_params = [{transform_indices = @transform_0, window_bounds = array<i64: 8, 768>}, {transform_indices = @transform_1, window_bounds = array<i64: 768, 1024>}, {transform_indices = @transform_2, window_bounds = array<i64: 1024, 128>}, {transform_indices = @transform_3, window_bounds = array<i64: 1, 8, 128>}]} {
    %c0_i32 = arith.constant 0 : i32
    %0 = arith.cmpi eq, %arg2, %c0_i32 : i32
    %1 = arith.extui %0 : i1 to i32
    %c0_i32_0 = arith.constant 0 : i32
    %2 = arith.cmpi ne, %1, %c0_i32_0 : i32
    scf.if %2 {
      %cst_10 = arith.constant 0.000000e+00 : f32
      %12 = vector.broadcast %cst_10 : f32 to vector<8x1024xf32>
      %c0_11 = arith.constant 0 : index
      %c0_12 = arith.constant 0 : index
      %13 = vector.load %arg7[%c0_11, %c0_12] : memref<8x1024xf32, #tpu.memory_space<vmem>>, vector<8x1024xf32>
      tpu.vector_store %arg7[%c0_11, %c0_12], %12 {strides = array<i32>} : memref<8x1024xf32, #tpu.memory_space<vmem>>, vector<8x1024xf32>,
    } else {
    }
    %c0 = arith.constant 0 : index
    %c0_1 = arith.constant 0 : index
    %3 = vector.load %arg7[%c0, %c0_1] : memref<8x1024xf32, #tpu.memory_space<vmem>>, vector<8x1024xf32>
    %c0_2 = arith.constant 0 : index
    %c0_3 = arith.constant 0 : index
    %4 = vector.load %arg3[%c0_2, %c0_3] : memref<8x768xbf16, #tpu.memory_space<vmem>>, vector<8x768xbf16>
    %c0_4 = arith.constant 0 : index
    %c0_5 = arith.constant 0 : index
    %5 = vector.load %arg4[%c0_4, %c0_5] : memref<768x1024xbf16, #tpu.memory_space<vmem>>, vector<768x1024xbf16>
    %cst = arith.constant dense<0.000000e+00> : vector<8x1024xf32>
    %6 = tpu.matmul %4, %5, %cst {dimension_numbers = #tpu.dot_dimension_numbers<[1], [0], [0], [1], [0, 0, 1, 1], [], []>} : vector<8x768xbf16>, vector<768x1024xbf16>, vector<8x1024xf32> -> vector<8x1024xf32>
    %7 = arith.addf %3, %6 : vector<8x1024xf32>
    %c0_6 = arith.constant 0 : index
    %c0_7 = arith.constant 0 : index
    %8 = vector.load %arg7[%c0_6, %c0_7] : memref<8x1024xf32, #tpu.memory_space<vmem>>, vector<8x1024xf32>
    tpu.vector_store %arg7[%c0_6, %c0_7], %7 {strides = array<i32>} : memref<8x1024xf32, #tpu.memory_space<vmem>>, vector<8x1024xf32>,
    %c0_i32_8 = arith.constant 0 : i32
    %9 = arith.cmpi eq, %arg2, %c0_i32_8 : i32
    %10 = arith.extui %9 : i1 to i32
    %c0_i32_9 = arith.constant 0 : i32
    %11 = arith.cmpi ne, %10, %c0_i32_9 : i32
    scf.if %11 {
      %c0_10 = arith.constant 0 : index
      %c0_11 = arith.constant 0 : index
      %12 = vector.load %arg7[%c0_10, %c0_11] : memref<8x1024xf32, #tpu.memory_space<vmem>>, vector<8x1024xf32>
      %13 = arith.truncf %12 : vector<8x1024xf32> to vector<8x1024xbf16>
      %c0_12 = arith.constant 0 : index
      %c0_13 = arith.constant 0 : index
      %14 = vector.load %arg5[%c0_12, %c0_13] : memref<1024x128xbf16, #tpu.memory_space<vmem>>, vector<1024x128xbf16>
      %cst_14 = arith.constant dense<0.000000e+00> : vector<8x128xf32>
      %15 = tpu.matmul %13, %14, %cst_14 {dimension_numbers = #tpu.dot_dimension_numbers<[1], [0], [0], [1], [0, 0, 1, 1], [], []>} : vector<8x1024xbf16>, vector<1024x128xbf16>, vector<8x128xf32> -> vector<8x128xf32>
      %c0_15 = arith.constant 0 : index
      %c0_16 = arith.constant 0 : index
      %c0_17 = arith.constant 0 : index
      %16 = vector.load %arg6[%c0_15, %c0_16, %c0_17] : memref<1x8x128xf32, #tpu.memory_space<vmem>>, vector<1x8x128xf32>
      %17 = vector.shape_cast %16 : vector<1x8x128xf32> to vector<8x128xf32>
      %18 = vector.shape_cast %15 : vector<8x128xf32> to vector<1x8x128xf32>
      tpu.vector_store %arg6[%c0_15, %c0_16, %c0_17], %18 {strides = array<i32>} : memref<1x8x128xf32, #tpu.memory_space<vmem>>, vector<1x8x128xf32>,
    } else {
    }
    return
  }
  func.func @transform_0(%arg0: i32, %arg1: i32, %arg2: i32) -> (i32, i32) {
    %c0_i32 = arith.constant 0 : i32
    return %arg1, %arg2 : i32, i32
  }
  func.func @transform_1(%arg0: i32, %arg1: i32, %arg2: i32) -> (i32, i32) {
    %c0_i32 = arith.constant 0 : i32
    return %arg2, %arg0 : i32, i32
  }
  func.func @transform_2(%arg0: i32, %arg1: i32, %arg2: i32) -> (i32, i32) {
    %c0_i32 = arith.constant 0 : i32
    %c0_i32_0 = arith.constant 0 : i32
    return %arg0, %c0_i32 : i32, i32
  }
  func.func @transform_3(%arg0: i32, %arg1: i32, %arg2: i32) -> (i32, i32, i32) {
    %c0_i32 = arith.constant 0 : i32
    %c0_i32_0 = arith.constant 0 : i32
    return %arg0, %arg1, %c0_i32 : i32, i32, i32
  }
}

</mosaic_0001>

<bundles_post_ra>
// kernel: tpu_custom_call.1
= control target key start
LH: loop header
LB: loop body
LE: loop exit
PB: predicated region body
PF: predicated region fallthrough
CT: control target
= control target key end

     0   :  { %8 = vsyncpa [#allocation4], 0  ;;  %s4495_s0 = inlined_call_operand.hbm [shape: bf16[8,768], index: 0, kind: input, shape index: {}]   ;;  %s4496_s1 = inlined_call_operand.hbm [shape: bf16[768,1024], index: 1, kind: input, shape index: {}]   ;;  %s4497_s2 = inlined_call_operand.hbm [shape: bf16[1024,128], index: 2, kind: input, shape index: {}]   ;;  %s4498_s3 = inlined_call_operand.hbm [shape: f32[1,8,128], index: 3, kind: output, shape index: {}]  }
   0x1   :  { %9 = vsyncpa [#allocation7], 0 }
   0x2   :  { %10 = vsyncpa [#allocation5], 0  ;;  %s4365_s12 = smov [#allocation6]   ;;  %s4271_s16 = scalar_lea.hbm %s4496_s1, 49152 }
   0x3   :  { %s26_s13 = sshll.u32 %s4365_s12, 4  ;;  %p4272_p0 = scmp.ne.s32.totalorder %s4496_s1, %s4271_s16  ;;  %s27_s13 = int_to_ptr.vmem [resolvable:$true] %s26_s13 }
   0x4   :  { %p4275_p1 = scmp.lt.u32.totalorder %s4271_s16, %s4496_s1 }
   0x6   :  { %p4277_p2 = pnand %p4275_p1, %p4272_p0 }
   0x8   :  { %4280 = shalt.err (!%p4277_p2)
}
   0x9   :  { %s4281_s21 = scalar_lea.vmem %s27_s13, 49152  ;;  %p4286_p4 = scmp.lt.s32.totalorder %s27_s13, %s27_s13 }
   0xa   :  { %p4282_p3 = scmp.ne.s32.totalorder %s27_s13, %s4281_s21  ;;  %p4287_p5 = scmp.lt.s32.totalorder %s4281_s21, %s4281_s21 }
   0xc   :  { %p4288_p6 = por %p4287_p5, %p4286_p4 }
   0xe   :  { %p4289_p7 = pnand %p4288_p6, %p4282_p3 }
  0x10   :  { %4292 = shalt.err (!%p4289_p7)
}
  0x11   :  { %s4366_s22 = smov 512   ;;  %s4367_s23 = smov 32  }
  0x12   :  { %32 = dma.hbm_to_vmem [thread:$0]  %s4496_s1, 49152, %s27_s13, [#allocation7], %s4366_s22, %s4366_s22, %s4367_s23  }
  0x13   :  { %s4368_s26 = smov [#allocation3]   ;;  %s4369_s28 = smov [#allocation8]  }
  0x14   :  { %s17_s27 = sshll.u32 %s4368_s26, 4  ;;  %s38_s29 = sshll.u32 %s4369_s28, 4  ;;  %s18_s27 = int_to_ptr.vmem [resolvable:$true] %s17_s27  ;;  %s39_s29 = int_to_ptr.vmem [resolvable:$true] %s38_s29 }
  0x15   :  { %s4293_s5 = scalar_lea.hbm %s4495_s0, 384 }
  0x16   :  { %p4294_p8 = scmp.ne.s32.totalorder %s4495_s0, %s4293_s5  ;;  %p4297_p9 = scmp.lt.u32.totalorder %s4293_s5, %s4495_s0 }
  0x18   :  { %p4299_p10 = pnand %p4297_p9, %p4294_p8 }
  0x1a   :  { %4302 = shalt.err (!%p4299_p10)
}
  0x1b   :  { %s4303_s1 = scalar_lea.vmem %s18_s27, 384  ;;  %p4308_p12 = scmp.lt.s32.totalorder %s18_s27, %s18_s27 }
  0x1c   :  { %p4304_p11 = scmp.ne.s32.totalorder %s18_s27, %s4303_s1  ;;  %p4309_p13 = scmp.lt.s32.totalorder %s4303_s1, %s4303_s1 }
  0x1e   :  { %p4310_p0 = por %p4309_p13, %p4308_p12 }
  0x20   :  { %p4311_p1 = pnand %p4310_p0, %p4304_p11 }
  0x22   :  { %4314 = shalt.err (!%p4311_p1)
}
  0x23   :  { %20 = dma.hbm_to_vmem [thread:$0]  %s4495_s0, 384, %s18_s27, [#allocation4]  }
  0x24   :  { %s4315_s14 = scalar_lea.hbm %s4497_s2, 8192 }
  0x25   :  { %p4316_p2 = scmp.ne.s32.totalorder %s4497_s2, %s4315_s14  ;;  %p4319_p3 = scmp.lt.u32.totalorder %s4315_s14, %s4497_s2 }
  0x27   :  { %p4321_p4 = pnand %p4319_p3, %p4316_p2 }
  0x29   :  { %4324 = shalt.err (!%p4321_p4)
}
  0x2a   :  { %s4325_s19 = scalar_lea.vmem %s39_s29, 8192  ;;  %p4330_p6 = scmp.lt.s32.totalorder %s39_s29, %s39_s29 }
  0x2b   :  { %p4326_p5 = scmp.ne.s32.totalorder %s39_s29, %s4325_s19  ;;  %p4331_p7 = scmp.lt.s32.totalorder %s4325_s19, %s4325_s19 }
  0x2d   :  { %p4332_p8 = por %p4331_p7, %p4330_p6 }
  0x2f   :  { %p4333_p9 = pnand %p4332_p8, %p4326_p5 }
  0x31   :  { %4336 = shalt.err (!%p4333_p9)
}
  0x32   :  { %s4370_s0 = smov 64   ;;  %s4371_s20 = smov 4  }
  0x33   :  { %44 = dma.hbm_to_vmem [thread:$0]  %s4497_s2, 8192, %s39_s29, [#allocation7], %s4370_s0, %s4370_s0, %s4371_s20  }
  0x34   :  { %4359 = dma.done.wait [#allocation4], 384  }
  0x35   :  { %4360 = vsyncadd [#allocation4], 4294966912 }
  0x36   :  { %4361 = dma.done.wait [#allocation7], 57344  }
  0x37   :  { %4362 = vsyncadd [#allocation7], 4294909952  ;;  %v78_v0 = vld [vmem:[#allocation6] sm:$0xff]  ;;  %v79_v2 = vld [vmem:[#allocation6 + $0x8] sm:$0xff]  ;;  %s4372_s2 = smov [#allocation9]  }
  0x38   :  { %v82_v1 = vld [vmem:[#allocation6 + $0x20] sm:$0xff]  ;;  %v83_v4 = vld [vmem:[#allocation6 + $0x28] sm:$0xff]  ;;  %s3609_s23 = sshll.u32 %s4372_s2, 4  ;;  %s3610_s23 = int_to_ptr.vmem [resolvable:$true] %s3609_s23 }
  0x39   :  { %v3626_v3 = vcombine.high %v78_v0, %v82_v1  ;;  %v3625_v5 = vcombine.low %v78_v0, %v82_v1  ;;  %v86_v6 = vld [vmem:[#allocation6 + $0x40] sm:$0xff]  ;;  %v3628_v8 = vcombine.high %v79_v2, %v83_v4  ;;  %v3627_v9 = vcombine.low %v79_v2, %v83_v4  ;;  %v87_v11 = vld [vmem:[#allocation6 + $0x48] sm:$0xff]  ;;  %s4337_s24 = scalar_lea.vmem %s3610_s23, 128  ;;  %p4342_p11 = scmp.lt.s32.totalorder %s3610_s23, %s3610_s23 }
  0x3a   :  { %v90_v7 = vld [vmem:[#allocation6 + $0x60] sm:$0xff]  ;;  %v91_v12 = vld [vmem:[#allocation6 + $0x68] sm:$0xff]  ;;  %p4338_p10 = scmp.ne.s32.totalorder %s3610_s23, %s4337_s24  ;;  %p4343_p12 = scmp.lt.s32.totalorder %s4337_s24, %s4337_s24 }
  0x3b   :  { %v3634_v10 = vcombine.high %v86_v6, %v90_v7  ;;  %v94_v13 = vld [vmem:[#allocation6 + $0x80] sm:$0xff]  ;;  %2403 = vmatprep.subr.bf16.mxu0 %v3626_v3  ;;  %v3636_v14 = vcombine.high %v87_v11, %v91_v12  ;;  %v95_v16 = vld [vmem:[#allocation6 + $0x88] sm:$0xff]  ;;  %2526 = vmatprep.subr.bf16.mxu1 %v3628_v8  ;;  %v3633_v18 = vcombine.low %v86_v6, %v90_v7 }
  0x3c   :  { %v98_v15 = vld [vmem:[#allocation6 + $0xa0] sm:$0xff]  ;;  %v99_v17 = vld [vmem:[#allocation6 + $0xa8] sm:$0xff]  ;;  %2404 = vmatpush1.bf16.msra.mxu0 %v3625_v5  ;;  %2527 = vmatpush1.bf16.msra.mxu1 %v3627_v9  ;;  %v3635_v19 = vcombine.low %v87_v11, %v91_v12  ;;  %p4344_p13 = por %p4343_p12, %p4342_p11 }
  0x3d   :  { %2405 = vmatprep.subr.bf16.mxu0 %v3634_v10  ;;  %v3642_v20 = vcombine.high %v94_v13, %v98_v15  ;;  %2528 = vmatprep.subr.bf16.mxu1 %v3636_v14  ;;  %v3644_v21 = vcombine.high %v95_v16, %v99_v17  ;;  %v102_v22 = vld [vmem:[#allocation6 + $0xc0] sm:$0xff]  ;;  %v103_v24 = vld [vmem:[#allocation6 + $0xc8] sm:$0xff]  ;;  %v3641_v26 = vcombine.low %v94_v13, %v98_v15 }
  0x3e   :  { %v106_v23 = vld [vmem:[#allocation6 + $0xe0] sm:$0xff]  ;;  %v107_v25 = vld [vmem:[#allocation6 + $0xe8] sm:$0xff]  ;;  %v3643_v27 = vcombine.low %v95_v16, %v99_v17  ;;  %p4345_p0 = pnand %p4344_p13, %p4338_p10 }
  0x3f   :  { %v3650_v28 = vcombine.high %v102_v22, %v106_v23  ;;  %v3652_v29 = vcombine.high %v103_v24, %v107_v25  ;;  %v110_v30 = vld [vmem:[#allocation6 + $0x100] sm:$0xff]  ;;  %v111_v32 = vld [vmem:[#allocation6 + $0x108] sm:$0xff]  ;;  %v3649_v34 = vcombine.low %v102_v22, %v106_v23  ;;  %v3651_v35 = vcombine.low %v103_v24, %v107_v25 }
  0x40   :  { %2406 = vmatpush1.bf16.msra.mxu0 %v3633_v18  ;;  %2529 = vmatpush1.bf16.msra.mxu1 %v3635_v19  ;;  %v114_v31 = vld [vmem:[#allocation6 + $0x120] sm:$0xff]  ;;  %v115_v33 = vld [vmem:[#allocation6 + $0x128] sm:$0xff] }
  0x41   :  { %2407 = vmatprep.subr.bf16.mxu0 %v3642_v20  ;;  %2530 = vmatprep.subr.bf16.mxu1 %v3644_v21  ;;  %v3658_v36 = vcombine.high %v110_v30, %v114_v31  ;;  %v3660_v37 = vcombine.high %v111_v32, %v115_v33  ;;  %v118_v38 = vld [vmem:[#allocation6 + $0x140] sm:$0xff]  ;;  %v119_v40 = vld [vmem:[#allocation6 + $0x148] sm:$0xff]  ;;  %v3657_v42 = vcombine.low %v110_v30, %v114_v31 }
  0x42   :  { %v122_v39 = vld [vmem:[#allocation6 + $0x160] sm:$0xff]  ;;  %v123_v41 = vld [vmem:[#allocation6 + $0x168] sm:$0xff]  ;;  %v3659_v43 = vcombine.low %v111_v32, %v115_v33 }
  0x43   :  { %v3666_v44 = vcombine.high %v118_v38, %v122_v39  ;;  %v3668_v45 = vcombine.high %v119_v40, %v123_v41  ;;  %v126_v46 = vld [vmem:[#allocation6 + $0x180] sm:$0xff]  ;;  %v127_v48 = vld [vmem:[#allocation6 + $0x188] sm:$0xff]  ;;  %v3665_v50 = vcombine.low %v118_v38, %v122_v39  ;;  %v3667_v51 = vcombine.low %v119_v40, %v123_v41 }
  0x44   :  { %2408 = vmatpush1.bf16.msra.mxu0 %v3641_v26  ;;  %2531 = vmatpush1.bf16.msra.mxu1 %v3643_v27  ;;  %v130_v47 = vld [vmem:[#allocation6 + $0x1a0] sm:$0xff]  ;;  %v131_v49 = vld [vmem:[#allocation6 + $0x1a8] sm:$0xff] }
  0x45   :  { %2409 = vmatprep.subr.bf16.mxu0 %v3650_v28  ;;  %2532 = vmatprep.subr.bf16.mxu1 %v3652_v29  ;;  %v3674_v52 = vcombine.high %v126_v46, %v130_v47  ;;  %v4429_v53 = vld [vmem:[#allocation3] sm:$0xff]  ;;  %v3676_v54 = vcombine.high %v127_v48, %v131_v49  ;;  %v134_v55 = vld [vmem:[#allocation6 + $0x1c0] sm:$0xff]  ;;  %v3673_v60 = vcombine.low %v126_v46, %v130_v47 }
  0x46   :  { %v138_v56 = vld [vmem:[#allocation6 + $0x1e0] sm:$0xff]  ;;  %v4433_v57 = vcombine.high %v4429_v53, %v4429_v53  ;;  %v135_v58 = vld [vmem:[#allocation6 + $0x1c8] sm:$0xff]  ;;  %v3675_v61 = vcombine.low %v127_v48, %v131_v49 }
  0x47   :  { %v139_v59 = vld [vmem:[#allocation6 + $0x1e8] sm:$0xff]  ;;  %v3682_v62 = vcombine.high %v134_v55, %v138_v56  ;;  %v142_v0 = vld [vmem:[#allocation6 + $0x200] sm:$0xff]  ;;  %v3681_v4 = vcombine.low %v134_v55, %v138_v56 }
  0x48   :  { %2410 = vmatpush1.bf16.msra.mxu0 %v3649_v34  ;;  %2533 = vmatpush1.bf16.msra.mxu1 %v3651_v35  ;;  %v3684_v63 = vcombine.high %v135_v58, %v139_v59  ;;  %v146_v1 = vld [vmem:[#allocation6 + $0x220] sm:$0xff]  ;;  %v143_v2 = vld [vmem:[#allocation6 + $0x208] sm:$0xff]  ;;  %v3683_v5 = vcombine.low %v135_v58, %v139_v59 }
  0x49   :  { %2411 = vmatprep.subr.bf16.mxu0 %v3658_v36  ;;  %2534 = vmatprep.subr.bf16.mxu1 %v3660_v37  ;;  %v147_v3 = vld [vmem:[#allocation6 + $0x228] sm:$0xff]  ;;  %v3690_v6 = vcombine.high %v142_v0, %v146_v1  ;;  %v150_v8 = vld [vmem:[#allocation6 + $0x240] sm:$0xff]  ;;  %v3689_v12 = vcombine.low %v142_v0, %v146_v1 }
  0x4a   :  { %2435 = vmatprep.mubr.bf16.mxu0 %v4433_v57  ;;  %2558 = vmatprep.mubr.bf16.mxu1 %v4433_v57  ;;  %v3692_v7 = vcombine.high %v143_v2, %v147_v3  ;;  %v154_v9 = vld [vmem:[#allocation6 + $0x260] sm:$0xff]  ;;  %v151_v10 = vld [vmem:[#allocation6 + $0x248] sm:$0xff]  ;;  %v3691_v13 = vcombine.low %v143_v2, %v147_v3 }
  0x4b   :  { %v155_v11 = vld [vmem:[#allocation6 + $0x268] sm:$0xff]  ;;  %v3698_v14 = vcombine.high %v150_v8, %v154_v9  ;;  %v158_v16 = vld [vmem:[#allocation6 + $0x280] sm:$0xff]  ;;  %v3697_v20 = vcombine.low %v150_v8, %v154_v9 }
  0x4c   :  { %2412 = vmatpush1.bf16.msra.mxu0 %v3657_v42  ;;  %2535 = vmatpush1.bf16.msra.mxu1 %v3659_v43  ;;  %v3700_v15 = vcombine.high %v151_v10, %v155_v11  ;;  %v162_v17 = vld [vmem:[#allocation6 + $0x2a0] sm:$0xff]  ;;  %v159_v18 = vld [vmem:[#allocation6 + $0x288] sm:$0xff]  ;;  %v3699_v21 = vcombine.low %v151_v10, %v155_v11 }
  0x4d   :  { %2413 = vmatprep.subr.bf16.mxu0 %v3666_v44  ;;  %2536 = vmatprep.subr.bf16.mxu1 %v3668_v45  ;;  %v163_v19 = vld [vmem:[#allocation6 + $0x2a8] sm:$0xff]  ;;  %v3706_v22 = vcombine.high %v158_v16, %v162_v17  ;;  %v166_v24 = vld [vmem:[#allocation6 + $0x2c0] sm:$0xff]  ;;  %v3705_v28 = vcombine.low %v158_v16, %v162_v17 }
  0x4e   :  { %v3708_v23 = vcombine.high %v159_v18, %v163_v19  ;;  %v170_v25 = vld [vmem:[#allocation6 + $0x2e0] sm:$0xff]  ;;  %v167_v26 = vld [vmem:[#allocation6 + $0x2c8] sm:$0xff]  ;;  %v3707_v29 = vcombine.low %v159_v18, %v163_v19 }
  0x4f   :  { %v171_v27 = vld [vmem:[#allocation6 + $0x2e8] sm:$0xff]  ;;  %v3714_v30 = vcombine.high %v166_v24, %v170_v25  ;;  %v174_v32 = vld [vmem:[#allocation6 + $0x300] sm:$0xff]  ;;  %v3713_v36 = vcombine.low %v166_v24, %v170_v25 }
  0x50   :  { %2414 = vmatpush1.bf16.msra.mxu0 %v3665_v50  ;;  %2537 = vmatpush1.bf16.msra.mxu1 %v3667_v51  ;;  %v3716_v31 = vcombine.high %v167_v26, %v171_v27  ;;  %v178_v33 = vld [vmem:[#allocation6 + $0x320] sm:$0xff]  ;;  %v175_v34 = vld [vmem:[#allocation6 + $0x308] sm:$0xff]  ;;  %v3715_v37 = vcombine.low %v167_v26, %v171_v27 }
  0x51   :  { %2415 = vmatprep.subr.bf16.mxu0 %v3674_v52  ;;  %2538 = vmatprep.subr.bf16.mxu1 %v3676_v54  ;;  %v179_v35 = vld [vmem:[#allocation6 + $0x328] sm:$0xff]  ;;  %v3722_v38 = vcombine.high %v174_v32, %v178_v33  ;;  %v182_v40 = vld [vmem:[#allocation6 + $0x340] sm:$0xff]  ;;  %v3721_v44 = vcombine.low %v174_v32, %v178_v33 }
  0x52   :  { %v3724_v39 = vcombine.high %v175_v34, %v179_v35  ;;  %v186_v41 = vld [vmem:[#allocation6 + $0x360] sm:$0xff]  ;;  %v183_v42 = vld [vmem:[#allocation6 + $0x348] sm:$0xff]  ;;  %v3723_v45 = vcombine.low %v175_v34, %v179_v35 }
  0x53   :  { %v187_v43 = vld [vmem:[#allocation6 + $0x368] sm:$0xff]  ;;  %v3730_v46 = vcombine.high %v182_v40, %v186_v41  ;;  %v190_v48 = vld [vmem:[#allocation6 + $0x380] sm:$0xff]  ;;  %v3729_v52 = vcombine.low %v182_v40, %v186_v41 }
  0x54   :  { %2416 = vmatpush1.bf16.msra.mxu0 %v3673_v60  ;;  %2539 = vmatpush1.bf16.msra.mxu1 %v3675_v61  ;;  %v3732_v47 = vcombine.high %v183_v42, %v187_v43  ;;  %v194_v49 = vld [vmem:[#allocation6 + $0x3a0] sm:$0xff]  ;;  %v191_v50 = vld [vmem:[#allocation6 + $0x388] sm:$0xff]  ;;  %v3731_v54 = vcombine.low %v183_v42, %v187_v43 }
  0x55   :  { %2417 = vmatprep.subr.bf16.mxu0 %v3682_v62  ;;  %2540 = vmatprep.subr.bf16.mxu1 %v3684_v63  ;;  %v195_v51 = vld [vmem:[#allocation6 + $0x3a8] sm:$0xff]  ;;  %v3738_v55 = vcombine.high %v190_v48, %v194_v49  ;;  %v198_v58 = vld [vmem:[#allocation6 + $0x3c0] sm:$0xff]  ;;  %v3737_v62 = vcombine.low %v190_v48, %v194_v49 }
  0x56   :  { %v3740_v56 = vcombine.high %v191_v50, %v195_v51  ;;  %v202_v59 = vld [vmem:[#allocation6 + $0x3e0] sm:$0xff]  ;;  %v199_v60 = vld [vmem:[#allocation6 + $0x3c8] sm:$0xff]  ;;  %v3739_v63 = vcombine.low %v191_v50, %v195_v51 }
  0x57   :  { %v203_v61 = vld [vmem:[#allocation6 + $0x3e8] sm:$0xff]  ;;  %v3746_v0 = vcombine.high %v198_v58, %v202_v59  ;;  %v206_v2 = vld [vmem:[#allocation6 + $0x400] sm:$0xff] }
  0x58   :  { %2418 = vmatpush1.bf16.msra.mxu0 %v3681_v4  ;;  %2541 = vmatpush1.bf16.msra.mxu1 %v3683_v5  ;;  %v3748_v1 = vcombine.high %v199_v60, %v203_v61  ;;  %v210_v3 = vld [vmem:[#allocation6 + $0x420] sm:$0xff]  ;;  %v207_v4 = vld [vmem:[#allocation6 + $0x408] sm:$0xff] }
  0x59   :  { %2419 = vmatprep.subr.bf16.mxu0 %v3690_v6  ;;  %2542 = vmatprep.subr.bf16.mxu1 %v3692_v7  ;;  %v211_v5 = vld [vmem:[#allocation6 + $0x428] sm:$0xff]  ;;  %v3745_v6 = vcombine.low %v198_v58, %v202_v59  ;;  %v3747_v7 = vcombine.low %v199_v60, %v203_v61  ;;  %v3754_v8 = vcombine.high %v206_v2, %v210_v3  ;;  %v214_v10 = vld [vmem:[#allocation6 + $0x440] sm:$0xff] }
  0x5a   :  { %v3756_v9 = vcombine.high %v207_v4, %v211_v5  ;;  %v218_v11 = vld [vmem:[#allocation6 + $0x460] sm:$0xff]  ;;  %v3753_v16 = vcombine.low %v206_v2, %v210_v3  ;;  %v3755_v17 = vcombine.low %v207_v4, %v211_v5 }
  0x5b   :  { %v3762_v18 = vcombine.high %v214_v10, %v218_v11  ;;  %v222_v19 = vld [vmem:[#allocation6 + $0x480] sm:$0xff]  ;;  %v3761_v24 = vcombine.low %v214_v10, %v218_v11 }
  0x5c   :  { %2420 = vmatpush1.bf16.msra.mxu0 %v3689_v12  ;;  %2543 = vmatpush1.bf16.msra.mxu1 %v3691_v13  ;;  %v4439_v12 = vcombine.low %v4429_v53, %v4429_v53  ;;  %v215_v13 = vld [vmem:[#allocation6 + $0x448] sm:$0xff]  ;;  %v230_v27 = vld [vmem:[#allocation6 + $0x4c0] sm:$0xff] }
  0x5d   :  { %2421 = vmatprep.subr.bf16.mxu0 %v3698_v14  ;;  %2544 = vmatprep.subr.bf16.mxu1 %v3700_v15  ;;  %v219_v14 = vld [vmem:[#allocation6 + $0x468] sm:$0xff]  ;;  %v4441_v15 = vld [vmem:[#allocation3 + $0x8] sm:$0xff]  ;;  %v238_v35 = vld [vmem:[#allocation6 + $0x500] sm:$0xff] }
  0x5e   :  { %v4445_v53 = vcombine.high %v4441_v15, %v4441_v15  ;;  %v3763_v25 = vcombine.low %v215_v13, %v219_v14  ;;  %v246_v43 = vld [vmem:[#allocation6 + $0x540] sm:$0xff] }
  0x5f   :  { %v254_v51 = vld [vmem:[#allocation6 + $0x580] sm:$0xff] }
  0x60   :  { %2422 = vmatpush1.bf16.msra.mxu0 %v3697_v20  ;;  %2545 = vmatpush1.bf16.msra.mxu1 %v3699_v21  ;;  %v226_v20 = vld [vmem:[#allocation6 + $0x4a0] sm:$0xff]  ;;  %v223_v21 = vld [vmem:[#allocation6 + $0x488] sm:$0xff] }
  0x61   :  { %2423 = vmatprep.subr.bf16.mxu0 %v3706_v22  ;;  %2546 = vmatprep.subr.bf16.mxu1 %v3708_v23  ;;  %v3764_v22 = vcombine.high %v215_v13, %v219_v14  ;;  %v227_v23 = vld [vmem:[#allocation6 + $0x4a8] sm:$0xff]  ;;  %v3770_v26 = vcombine.high %v222_v19, %v226_v20  ;;  %v3769_v32 = vcombine.low %v222_v19, %v226_v20  ;;  %v262_v61 = vld [vmem:[#allocation6 + $0x5c0] sm:$0xff] }
  0x62   :  { %v3771_v33 = vcombine.low %v223_v21, %v227_v23  ;;  %v270_v5 = vld [vmem:[#allocation6 + $0x600] sm:$0xff]  ;;  %v283_v19 = vld [vmem:[#allocation6 + $0x668] sm:$0xff] }
  0x63   :  { %v278_v14 = vld [vmem:[#allocation6 + $0x640] sm:$0xff] }
  0x64   :  { %2424 = vmatpush1.bf16.msra.mxu0 %v3705_v28  ;;  %2547 = vmatpush1.bf16.msra.mxu1 %v3707_v29  ;;  %v234_v28 = vld [vmem:[#allocation6 + $0x4e0] sm:$0xff]  ;;  %v231_v29 = vld [vmem:[#allocation6 + $0x4c8] sm:$0xff] }
  0x65   :  { %2425 = vmatprep.subr.bf16.mxu0 %v3714_v30  ;;  %2548 = vmatprep.subr.bf16.mxu1 %v3716_v31  ;;  %v3772_v30 = vcombine.high %v223_v21, %v227_v23  ;;  %v235_v31 = vld [vmem:[#allocation6 + $0x4e8] sm:$0xff]  ;;  %v3778_v34 = vcombine.high %v230_v27, %v234_v28  ;;  %v3777_v40 = vcombine.low %v230_v27, %v234_v28  ;;  %v286_v23 = vld [vmem:[#allocation6 + $0x680] sm:$0xff] }
  0x66   :  { %v3779_v41 = vcombine.low %v231_v29, %v235_v31  ;;  %v291_v27 = vld [vmem:[#allocation6 + $0x6a8] sm:$0xff] }
  0x68   :  { %2426 = vmatpush1.bf16.msra.mxu0 %v3713_v36  ;;  %2549 = vmatpush1.bf16.msra.mxu1 %v3715_v37  ;;  %v242_v36 = vld [vmem:[#allocation6 + $0x520] sm:$0xff]  ;;  %v239_v37 = vld [vmem:[#allocation6 + $0x508] sm:$0xff] }
  0x69   :  { %2427 = vmatprep.subr.bf16.mxu0 %v3722_v38  ;;  %2550 = vmatprep.subr.bf16.mxu1 %v3724_v39  ;;  %v3780_v38 = vcombine.high %v231_v29, %v235_v31  ;;  %v243_v39 = vld [vmem:[#allocation6 + $0x528] sm:$0xff]  ;;  %v3786_v42 = vcombine.high %v238_v35, %v242_v36  ;;  %v3785_v48 = vcombine.low %v238_v35, %v242_v36  ;;  %v294_v31 = vld [vmem:[#allocation6 + $0x6c0] sm:$0xff] }
  0x6a   :  { %v3787_v49 = vcombine.low %v239_v37, %v243_v39  ;;  %v299_v35 = vld [vmem:[#allocation6 + $0x6e8] sm:$0xff] }
  0x6c   :  { %2428 = vmatpush1.bf16.msra.mxu0 %v3721_v44  ;;  %2551 = vmatpush1.bf16.msra.mxu1 %v3723_v45  ;;  %v250_v44 = vld [vmem:[#allocation6 + $0x560] sm:$0xff]  ;;  %v247_v45 = vld [vmem:[#allocation6 + $0x548] sm:$0xff] }
  0x6d   :  { %2429 = vmatprep.subr.bf16.mxu0 %v3730_v46  ;;  %2552 = vmatprep.subr.bf16.mxu1 %v3732_v47  ;;  %v3788_v46 = vcombine.high %v239_v37, %v243_v39  ;;  %v251_v47 = vld [vmem:[#allocation6 + $0x568] sm:$0xff]  ;;  %v3794_v50 = vcombine.high %v246_v43, %v250_v44  ;;  %v3793_v58 = vcombine.low %v246_v43, %v250_v44  ;;  %v302_v39 = vld [vmem:[#allocation6 + $0x700] sm:$0xff] }
  0x6e   :  { %v3795_v59 = vcombine.low %v247_v45, %v251_v47  ;;  %v307_v43 = vld [vmem:[#allocation6 + $0x728] sm:$0xff] }
  0x70   :  { %2430 = vmatpush1.bf16.msra.mxu0 %v3729_v52  ;;  %2553 = vmatpush1.bf16.msra.mxu1 %v3731_v54  ;;  %v258_v52 = vld [vmem:[#allocation6 + $0x5a0] sm:$0xff]  ;;  %v255_v54 = vld [vmem:[#allocation6 + $0x588] sm:$0xff] }
  0x71   :  { %2431 = vmatprep.subr.bf16.mxu0 %v3738_v55  ;;  %2554 = vmatprep.subr.bf16.mxu1 %v3740_v56  ;;  %v3796_v55 = vcombine.high %v247_v45, %v251_v47  ;;  %v259_v56 = vld [vmem:[#allocation6 + $0x5a8] sm:$0xff]  ;;  %v3802_v60 = vcombine.high %v254_v51, %v258_v52  ;;  %v3801_v2 = vcombine.low %v254_v51, %v258_v52  ;;  %v310_v47 = vld [vmem:[#allocation6 + $0x740] sm:$0xff] }
  0x72   :  { %v3803_v3 = vcombine.low %v255_v54, %v259_v56  ;;  %v315_v51 = vld [vmem:[#allocation6 + $0x768] sm:$0xff] }
  0x74   :  { %2432 = vmatpush1.bf16.msra.mxu0 %v3737_v62  ;;  %2555 = vmatpush1.bf16.msra.mxu1 %v3739_v63  ;;  %v266_v62 = vld [vmem:[#allocation6 + $0x5e0] sm:$0xff]  ;;  %v263_v63 = vld [vmem:[#allocation6 + $0x5c8] sm:$0xff] }
  0x75   :  { %2433 = vmatprep.subr.bf16.mxu0 %v3746_v0  ;;  %2556 = vmatprep.subr.bf16.mxu1 %v3748_v1  ;;  %v3804_v0 = vcombine.high %v255_v54, %v259_v56  ;;  %v267_v1 = vld [vmem:[#allocation6 + $0x5e8] sm:$0xff]  ;;  %v3810_v4 = vcombine.high %v262_v61, %v266_v62  ;;  %v3809_v10 = vcombine.low %v262_v61, %v266_v62  ;;  %v318_v56 = vld [vmem:[#allocation6 + $0x780] sm:$0xff] }
  0x76   :  { %v3811_v11 = vcombine.low %v263_v63, %v267_v1  ;;  %v323_v61 = vld [vmem:[#allocation6 + $0x7a8] sm:$0xff] }
  0x78   :  { %2434 = vmatpush1.bf16.msra.mxu0 %v3745_v6  ;;  %2557 = vmatpush1.bf16.msra.mxu1 %v3747_v7  ;;  %v274_v6 = vld [vmem:[#allocation6 + $0x620] sm:$0xff]  ;;  %v271_v7 = vld [vmem:[#allocation6 + $0x608] sm:$0xff] }
  0x79   :  { %2444 = vmatprep.subr.bf16.mxu0 %v3754_v8  ;;  %2567 = vmatprep.subr.bf16.mxu1 %v3756_v9  ;;  %v3812_v8 = vcombine.high %v263_v63, %v267_v1  ;;  %v275_v9 = vld [vmem:[#allocation6 + $0x628] sm:$0xff]  ;;  %v3818_v13 = vcombine.high %v270_v5, %v274_v6  ;;  %v3817_v20 = vcombine.low %v270_v5, %v274_v6  ;;  %v326_v1 = vld [vmem:[#allocation6 + $0x7c0] sm:$0xff] }
  0x7a   :  { %v3819_v21 = vcombine.low %v271_v7, %v275_v9  ;;  %v331_v5 = vld [vmem:[#allocation6 + $0x7e8] sm:$0xff] }
  0x7b   :  { %2436 = vmatmul.mubr.bf16.vlgmr.msra.gmra.mrb[0].mxu0 %v4439_v12  ;;  %2559 = vmatmul.mubr.bf16.vlgmr.msra.gmra.mrb[0].mxu1 %v4439_v12 }
  0x7c   :  { %2445 = vmatpush1.bf16.msra.mxu0 %v3753_v16  ;;  %2568 = vmatpush1.bf16.msra.mxu1 %v3755_v17  ;;  %v282_v16 = vld [vmem:[#allocation6 + $0x660] sm:$0xff]  ;;  %v279_v17 = vld [vmem:[#allocation6 + $0x648] sm:$0xff] }
  0x7d   :  { %2446 = vmatprep.subr.bf16.mxu0 %v3762_v18  ;;  %2569 = vmatprep.subr.bf16.mxu1 %v3764_v22  ;;  %v3820_v18 = vcombine.high %v271_v7, %v275_v9  ;;  %v3826_v22 = vcombine.high %v278_v14, %v282_v16  ;;  %v3825_v28 = vcombine.low %v278_v14, %v282_v16  ;;  %v334_v9 = vld [vmem:[#allocation6 + $0x800] sm:$0xff]  ;;  %v339_v14 = vld [vmem:[#allocation6 + $0x828] sm:$0xff] }
  0x7e   :  { %2476 = vmatprep.mubr.bf16.mxu0 %v4445_v53  ;;  %2599 = vmatprep.mubr.bf16.mxu1 %v4445_v53  ;;  %v3827_v29 = vcombine.low %v279_v17, %v283_v19 }
  0x80   :  { %2447 = vmatpush1.bf16.msra.mxu0 %v3761_v24  ;;  %2570 = vmatpush1.bf16.msra.mxu1 %v3763_v25  ;;  %v290_v24 = vld [vmem:[#allocation6 + $0x6a0] sm:$0xff]  ;;  %v287_v25 = vld [vmem:[#allocation6 + $0x688] sm:$0xff] }
  0x81   :  { %2448 = vmatprep.subr.bf16.mxu0 %v3770_v26  ;;  %2571 = vmatprep.subr.bf16.mxu1 %v3772_v30  ;;  %v3828_v26 = vcombine.high %v279_v17, %v283_v19  ;;  %v3834_v30 = vcombine.high %v286_v23, %v290_v24  ;;  %v3833_v36 = vcombine.low %v286_v23, %v290_v24  ;;  %v342_v17 = vld [vmem:[#allocation6 + $0x840] sm:$0xff]  ;;  %v4451_v24 = vld [vmem:[#allocation3 + $0x10] sm:$0xff] }
  0x82   :  { %v3835_v37 = vcombine.low %v287_v25, %v291_v27 }
  0x84   :  { %2449 = vmatpush1.bf16.msra.mxu0 %v3769_v32  ;;  %2572 = vmatpush1.bf16.msra.mxu1 %v3771_v33  ;;  %v298_v32 = vld [vmem:[#allocation6 + $0x6e0] sm:$0xff]  ;;  %v295_v33 = vld [vmem:[#allocation6 + $0x6c8] sm:$0xff] }
  0x85   :  { %2450 = vmatprep.subr.bf16.mxu0 %v3778_v34  ;;  %2573 = vmatprep.subr.bf16.mxu1 %v3780_v38  ;;  %v3836_v34 = vcombine.high %v287_v25, %v291_v27  ;;  %v3842_v38 = vcombine.high %v294_v31, %v298_v32  ;;  %v3841_v44 = vcombine.low %v294_v31, %v298_v32  ;;  %v354_v31 = vld [vmem:[#allocation6 + $0x8a0] sm:$0xff] }
  0x86   :  { %v3843_v45 = vcombine.low %v295_v33, %v299_v35  ;;  %v4455_v25 = vcombine.low %v4441_v15, %v4441_v15  ;;  %v4459_v32 = vcombine.high %v4451_v24, %v4451_v24 }
  0x88   :  { %2451 = vmatpush1.bf16.msra.mxu0 %v3777_v40  ;;  %2574 = vmatpush1.bf16.msra.mxu1 %v3779_v41  ;;  %v306_v40 = vld [vmem:[#allocation6 + $0x720] sm:$0xff]  ;;  %v303_v41 = vld [vmem:[#allocation6 + $0x708] sm:$0xff] }
  0x89   :  { %2452 = vmatprep.subr.bf16.mxu0 %v3786_v42  ;;  %2575 = vmatprep.subr.bf16.mxu1 %v3788_v46  ;;  %v3844_v42 = vcombine.high %v295_v33, %v299_v35  ;;  %v3850_v46 = vcombine.high %v302_v39, %v306_v40  ;;  %v3849_v52 = vcombine.low %v302_v39, %v306_v40  ;;  %v351_v33 = vld [vmem:[#allocation6 + $0x888] sm:$0xff]  ;;  %v362_v39 = vld [vmem:[#allocation6 + $0x8e0] sm:$0xff] }
  0x8a   :  { %v3851_v54 = vcombine.low %v303_v41, %v307_v43  ;;  %v359_v40 = vld [vmem:[#allocation6 + $0x8c8] sm:$0xff] }
  0x8c   :  { %2453 = vmatpush1.bf16.msra.mxu0 %v3785_v48  ;;  %2576 = vmatpush1.bf16.msra.mxu1 %v3787_v49  ;;  %v314_v48 = vld [vmem:[#allocation6 + $0x760] sm:$0xff]  ;;  %v311_v49 = vld [vmem:[#allocation6 + $0x748] sm:$0xff] }
  0x8d   :  { %2454 = vmatprep.subr.bf16.mxu0 %v3794_v50  ;;  %2577 = vmatprep.subr.bf16.mxu1 %v3796_v55  ;;  %v3852_v50 = vcombine.high %v303_v41, %v307_v43  ;;  %v3858_v55 = vcombine.high %v310_v47, %v314_v48  ;;  %v3857_v62 = vcombine.low %v310_v47, %v314_v48  ;;  %v363_v41 = vld [vmem:[#allocation6 + $0x8e8] sm:$0xff]  ;;  %v370_v47 = vld [vmem:[#allocation6 + $0x920] sm:$0xff] }
  0x8e   :  { %v3859_v63 = vcombine.low %v311_v49, %v315_v51  ;;  %v367_v48 = vld [vmem:[#allocation6 + $0x908] sm:$0xff] }
  0x90   :  { %2455 = vmatpush1.bf16.msra.mxu0 %v3793_v58  ;;  %2578 = vmatpush1.bf16.msra.mxu1 %v3795_v59  ;;  %v322_v58 = vld [vmem:[#allocation6 + $0x7a0] sm:$0xff]  ;;  %v319_v59 = vld [vmem:[#allocation6 + $0x788] sm:$0xff] }
  0x91   :  { %2456 = vmatprep.subr.bf16.mxu0 %v3802_v60  ;;  %2579 = vmatprep.subr.bf16.mxu1 %v3804_v0  ;;  %v3860_v60 = vcombine.high %v311_v49, %v315_v51  ;;  %v3866_v0 = vcombine.high %v318_v56, %v322_v58  ;;  %v3865_v6 = vcombine.low %v318_v56, %v322_v58  ;;  %v371_v49 = vld [vmem:[#allocation6 + $0x928] sm:$0xff]  ;;  %v378_v56 = vld [vmem:[#allocation6 + $0x960] sm:$0xff] }
  0x92   :  { %v3867_v7 = vcombine.low %v319_v59, %v323_v61  ;;  %v3907_v51 = vcombine.low %v359_v40, %v363_v41  ;;  %v375_v58 = vld [vmem:[#allocation6 + $0x948] sm:$0xff] }
  0x94   :  { %2457 = vmatpush1.bf16.msra.mxu0 %v3801_v2  ;;  %2580 = vmatpush1.bf16.msra.mxu1 %v3803_v3  ;;  %v330_v2 = vld [vmem:[#allocation6 + $0x7e0] sm:$0xff]  ;;  %v327_v3 = vld [vmem:[#allocation6 + $0x7c8] sm:$0xff] }
  0x95   :  { %2458 = vmatprep.subr.bf16.mxu0 %v3810_v4  ;;  %2581 = vmatprep.subr.bf16.mxu1 %v3812_v8  ;;  %v3868_v4 = vcombine.high %v319_v59, %v323_v61  ;;  %v3874_v8 = vcombine.high %v326_v1, %v330_v2  ;;  %v3873_v16 = vcombine.low %v326_v1, %v330_v2  ;;  %v379_v59 = vld [vmem:[#allocation6 + $0x968] sm:$0xff]  ;;  %v386_v1 = vld [vmem:[#allocation6 + $0x9a0] sm:$0xff] }
  0x96   :  { %v3915_v61 = vcombine.low %v367_v48, %v371_v49  ;;  %v383_v2 = vld [vmem:[#allocation6 + $0x988] sm:$0xff] }
  0x98   :  { %2459 = vmatpush1.bf16.msra.mxu0 %v3809_v10  ;;  %2582 = vmatpush1.bf16.msra.mxu1 %v3811_v11  ;;  %v338_v10 = vld [vmem:[#allocation6 + $0x820] sm:$0xff]  ;;  %v335_v11 = vld [vmem:[#allocation6 + $0x808] sm:$0xff] }
  0x99   :  { %2460 = vmatprep.subr.bf16.mxu0 %v3818_v13  ;;  %2583 = vmatprep.subr.bf16.mxu1 %v3820_v18  ;;  %v3876_v13 = vcombine.high %v327_v3, %v331_v5  ;;  %v3875_v18 = vcombine.low %v327_v3, %v331_v5  ;;  %v3882_v19 = vcombine.high %v334_v9, %v338_v10  ;;  %v387_v3 = vld [vmem:[#allocation6 + $0x9a8] sm:$0xff] }
  0x9a   :  { %v3884_v23 = vcombine.high %v335_v11, %v339_v14  ;;  %v3883_v27 = vcombine.low %v335_v11, %v339_v14  ;;  %v3923_v5 = vcombine.low %v375_v58, %v379_v59  ;;  %v395_v11 = vld [vmem:[#allocation6 + $0x9e8] sm:$0xff]  ;;  %v3931_v14 = vcombine.low %v383_v2, %v387_v3 }
  0x9c   :  { %2461 = vmatpush1.bf16.msra.mxu0 %v3817_v20  ;;  %2584 = vmatpush1.bf16.msra.mxu1 %v3819_v21  ;;  %v346_v20 = vld [vmem:[#allocation6 + $0x860] sm:$0xff]  ;;  %v343_v21 = vld [vmem:[#allocation6 + $0x848] sm:$0xff] }
  0x9d   :  { %2462 = vmatprep.subr.bf16.mxu0 %v3826_v22  ;;  %2585 = vmatprep.subr.bf16.mxu1 %v3828_v26  ;;  %v347_v22 = vld [vmem:[#allocation6 + $0x868] sm:$0xff]  ;;  %v3881_v26 = vcombine.low %v334_v9, %v338_v10  ;;  %v3889_v15 = vcombine.low %v342_v17, %v346_v20  ;;  %v394_v9 = vld [vmem:[#allocation6 + $0x9e0] sm:$0xff] }
  0x9e   :  { %v3891_v35 = vcombine.low %v343_v21, %v347_v22  ;;  %v391_v10 = vld [vmem:[#allocation6 + $0x9c8] sm:$0xff] }
  0xa0   :  { %2463 = vmatpush1.bf16.msra.mxu0 %v3825_v28  ;;  %2586 = vmatpush1.bf16.msra.mxu1 %v3827_v29  ;;  %v3890_v28 = vcombine.high %v342_v17, %v346_v20  ;;  %v3892_v29 = vcombine.high %v343_v21, %v347_v22  ;;  %v3940_v17 = vcombine.high %v391_v10, %v395_v11  ;;  %v399_v20 = vld [vmem:[#allocation6 + $0xa08] sm:$0xff] }
  0xa1   :  { %2464 = vmatprep.subr.bf16.mxu0 %v3834_v30  ;;  %2587 = vmatprep.subr.bf16.mxu1 %v3836_v34  ;;  %v350_v30 = vld [vmem:[#allocation6 + $0x880] sm:$0xff]  ;;  %v355_v34 = vld [vmem:[#allocation6 + $0x8a8] sm:$0xff] }
  0xa2   :  { %v3899_v43 = vcombine.low %v351_v33, %v355_v34  ;;  %v403_v21 = vld [vmem:[#allocation6 + $0xa28] sm:$0xff] }
  0xa4   :  { %2465 = vmatpush1.bf16.msra.mxu0 %v3833_v36  ;;  %2588 = vmatpush1.bf16.msra.mxu1 %v3835_v37  ;;  %v3898_v36 = vcombine.high %v350_v30, %v354_v31  ;;  %v3900_v37 = vcombine.high %v351_v33, %v355_v34  ;;  %v3947_v34 = vcombine.low %v399_v20, %v403_v21 }
  0xa5   :  { %2466 = vmatprep.subr.bf16.mxu0 %v3842_v38  ;;  %2589 = vmatprep.subr.bf16.mxu1 %v3844_v42  ;;  %v358_v38 = vld [vmem:[#allocation6 + $0x8c0] sm:$0xff]  ;;  %v3897_v42 = vcombine.low %v350_v30, %v354_v31  ;;  %v407_v30 = vld [vmem:[#allocation6 + $0xa48] sm:$0xff] }
  0xa6   :  { %v411_v31 = vld [vmem:[#allocation6 + $0xa68] sm:$0xff] }
  0xa8   :  { %2467 = vmatpush1.bf16.msra.mxu0 %v3841_v44  ;;  %2590 = vmatpush1.bf16.msra.mxu1 %v3843_v45  ;;  %v3906_v44 = vcombine.high %v358_v38, %v362_v39  ;;  %v3908_v45 = vcombine.high %v359_v40, %v363_v41  ;;  %v3955_v41 = vcombine.low %v407_v30, %v411_v31 }
  0xa9   :  { %2468 = vmatprep.subr.bf16.mxu0 %v3850_v46  ;;  %2591 = vmatprep.subr.bf16.mxu1 %v3852_v50  ;;  %v366_v46 = vld [vmem:[#allocation6 + $0x900] sm:$0xff]  ;;  %v3905_v50 = vcombine.low %v358_v38, %v362_v39  ;;  %v415_v38 = vld [vmem:[#allocation6 + $0xa88] sm:$0xff] }
  0xaa   :  { %v419_v39 = vld [vmem:[#allocation6 + $0xaa8] sm:$0xff] }
  0xac   :  { %2469 = vmatpush1.bf16.msra.mxu0 %v3849_v52  ;;  %2592 = vmatpush1.bf16.msra.mxu1 %v3851_v54  ;;  %v3914_v52 = vcombine.high %v366_v46, %v370_v47  ;;  %v3916_v54 = vcombine.high %v367_v48, %v371_v49  ;;  %v3963_v49 = vcombine.low %v415_v38, %v419_v39 }
  0xad   :  { %2470 = vmatprep.subr.bf16.mxu0 %v3858_v55  ;;  %2593 = vmatprep.subr.bf16.mxu1 %v3860_v60  ;;  %v374_v55 = vld [vmem:[#allocation6 + $0x940] sm:$0xff]  ;;  %v3913_v60 = vcombine.low %v366_v46, %v370_v47  ;;  %v423_v46 = vld [vmem:[#allocation6 + $0xac8] sm:$0xff] }
  0xae   :  { %v427_v47 = vld [vmem:[#allocation6 + $0xae8] sm:$0xff] }
  0xb0   :  { %2471 = vmatpush1.bf16.msra.mxu0 %v3857_v62  ;;  %2594 = vmatpush1.bf16.msra.mxu1 %v3859_v63  ;;  %v3922_v62 = vcombine.high %v374_v55, %v378_v56  ;;  %v3924_v63 = vcombine.high %v375_v58, %v379_v59  ;;  %v3971_v59 = vcombine.low %v423_v46, %v427_v47 }
  0xb1   :  { %2472 = vmatprep.subr.bf16.mxu0 %v3866_v0  ;;  %2595 = vmatprep.subr.bf16.mxu1 %v3868_v4  ;;  %v382_v0 = vld [vmem:[#allocation6 + $0x980] sm:$0xff]  ;;  %v3921_v4 = vcombine.low %v374_v55, %v378_v56  ;;  %v431_v55 = vld [vmem:[#allocation6 + $0xb08] sm:$0xff] }
  0xb2   :  { %v435_v56 = vld [vmem:[#allocation6 + $0xb28] sm:$0xff] }
  0xb4   :  { %2473 = vmatpush1.bf16.msra.mxu0 %v3865_v6  ;;  %2596 = vmatpush1.bf16.msra.mxu1 %v3867_v7  ;;  %v3930_v6 = vcombine.high %v382_v0, %v386_v1  ;;  %v3932_v7 = vcombine.high %v383_v2, %v387_v3  ;;  %v3979_v3 = vcombine.low %v431_v55, %v435_v56 }
  0xb5   :  { %2474 = vmatprep.subr.bf16.mxu0 %v3874_v8  ;;  %2597 = vmatprep.subr.bf16.mxu1 %v3876_v13  ;;  %v390_v8 = vld [vmem:[#allocation6 + $0x9c0] sm:$0xff]  ;;  %v3929_v13 = vcombine.low %v382_v0, %v386_v1  ;;  %v439_v0 = vld [vmem:[#allocation6 + $0xb48] sm:$0xff] }
  0xb6   :  { %v3937_v22 = vcombine.low %v390_v8, %v394_v9  ;;  %v443_v1 = vld [vmem:[#allocation6 + $0xb68] sm:$0xff] }
  0xb8   :  { %2475 = vmatpush1.bf16.msra.mxu0 %v3873_v16  ;;  %2598 = vmatpush1.bf16.msra.mxu1 %v3875_v18  ;;  %v3938_v16 = vcombine.high %v390_v8, %v394_v9  ;;  %v398_v18 = vld [vmem:[#allocation6 + $0xa00] sm:$0xff]  ;;  %v447_v8 = vld [vmem:[#allocation6 + $0xb88] sm:$0xff] }
  0xb9   :  { %2485 = vmatprep.subr.bf16.mxu0 %v3882_v19  ;;  %2608 = vmatprep.subr.bf16.mxu1 %v3884_v23  ;;  %v402_v19 = vld [vmem:[#allocation6 + $0xa20] sm:$0xff]  ;;  %v3939_v23 = vcombine.low %v391_v10, %v395_v11  ;;  %v451_v9 = vld [vmem:[#allocation6 + $0xba8] sm:$0xff]  ;;  %v3987_v11 = vcombine.low %v439_v0, %v443_v1 }
  0xba   :  { %v3945_v33 = vcombine.low %v398_v18, %v402_v19 }
  0xbb   :  { %2477 = vmatmul.mubr.bf16.vlgmr.msra.gmra.mrb[0].mxu0 %v4455_v25  ;;  %2600 = vmatmul.mubr.bf16.vlgmr.msra.gmra.mrb[0].mxu1 %v4455_v25 }
  0xbc   :  { %2486 = vmatpush1.bf16.msra.mxu0 %v3881_v26  ;;  %2609 = vmatpush1.bf16.msra.mxu1 %v3883_v27  ;;  %v3946_v26 = vcombine.high %v398_v18, %v402_v19  ;;  %v3948_v27 = vcombine.high %v399_v20, %v403_v21  ;;  %v455_v18 = vld [vmem:[#allocation6 + $0xbc8] sm:$0xff]  ;;  %v3995_v21 = vcombine.low %v447_v8, %v451_v9 }
  0xbd   :  { %2487 = vmatprep.subr.bf16.mxu0 %v3890_v28  ;;  %2610 = vmatprep.subr.bf16.mxu1 %v3892_v29  ;;  %v406_v28 = vld [vmem:[#allocation6 + $0xa40] sm:$0xff]  ;;  %v459_v19 = vld [vmem:[#allocation6 + $0xbe8] sm:$0xff] }
  0xbe   :  { %2517 = vmatprep.mubr.bf16.mxu0 %v4459_v32  ;;  %2640 = vmatprep.mubr.bf16.mxu1 %v4459_v32  ;;  %v410_v29 = vld [vmem:[#allocation6 + $0xa60] sm:$0xff] }
  0xbf   :  { %v3953_v40 = vcombine.low %v406_v28, %v410_v29 }
  0xc0   :  { %2488 = vmatpush1.bf16.msra.mxu0 %v3889_v15  ;;  %2611 = vmatpush1.bf16.msra.mxu1 %v3891_v35  ;;  %v3954_v15 = vcombine.high %v406_v28, %v410_v29  ;;  %v3956_v35 = vcombine.high %v407_v30, %v411_v31  ;;  %v81_v28 = vld [vmem:[#allocation6 + $0x18] sm:$0xff]  ;;  %v4003_v31 = vcombine.low %v455_v18, %v459_v19 }
  0xc1   :  { %2489 = vmatprep.subr.bf16.mxu0 %v3898_v36  ;;  %2612 = vmatprep.subr.bf16.mxu1 %v3900_v37  ;;  %v414_v36 = vld [vmem:[#allocation6 + $0xa80] sm:$0xff]  ;;  %v85_v29 = vld [vmem:[#allocation6 + $0x38] sm:$0xff] }
  0xc2   :  { %v418_v37 = vld [vmem:[#allocation6 + $0xaa0] sm:$0xff] }
  0xc3   :  { %v3961_v48 = vcombine.low %v414_v36, %v418_v37 }
  0xc4   :  { %2490 = vmatpush1.bf16.msra.mxu0 %v3897_v42  ;;  %2613 = vmatpush1.bf16.msra.mxu1 %v3899_v43  ;;  %v3962_v42 = vcombine.high %v414_v36, %v418_v37  ;;  %v3964_v43 = vcombine.high %v415_v38, %v419_v39  ;;  %v4467_v36 = vcombine.low %v4451_v24, %v4451_v24  ;;  %v89_v37 = vld [vmem:[#allocation6 + $0x58] sm:$0xff] }
  0xc5   :  { %2491 = vmatprep.subr.bf16.mxu0 %v3906_v44  ;;  %2614 = vmatprep.subr.bf16.mxu1 %v3908_v45  ;;  %v422_v44 = vld [vmem:[#allocation6 + $0xac0] sm:$0xff]  ;;  %v93_v38 = vld [vmem:[#allocation6 + $0x78] sm:$0xff] }
  0xc6   :  { %v426_v45 = vld [vmem:[#allocation6 + $0xae0] sm:$0xff] }
  0xc7   :  { %v3969_v58 = vcombine.low %v422_v44, %v426_v45 }
  0xc8   :  { %2492 = vmatpush1.bf16.msra.mxu0 %v3905_v50  ;;  %2615 = vmatpush1.bf16.msra.mxu1 %v3907_v51  ;;  %v3970_v50 = vcombine.high %v422_v44, %v426_v45  ;;  %v3972_v51 = vcombine.high %v423_v46, %v427_v47  ;;  %v100_v44 = vld [vmem:[#allocation6 + $0xb0] sm:$0xff]  ;;  %v97_v45 = vld [vmem:[#allocation6 + $0x98] sm:$0xff]  ;;  %v3639_v47 = vcombine.low %v89_v37, %v93_v38 }
  0xc9   :  { %2493 = vmatprep.subr.bf16.mxu0 %v3914_v52  ;;  %2616 = vmatprep.subr.bf16.mxu1 %v3916_v54  ;;  %v430_v52 = vld [vmem:[#allocation6 + $0xb00] sm:$0xff]  ;;  %v101_v46 = vld [vmem:[#allocation6 + $0xb8] sm:$0xff] }
  0xca   :  { %v434_v54 = vld [vmem:[#allocation6 + $0xb20] sm:$0xff] }
  0xcb   :  { %v3977_v2 = vcombine.low %v430_v52, %v434_v54 }
  0xcc   :  { %2494 = vmatpush1.bf16.msra.mxu0 %v3913_v60  ;;  %2617 = vmatpush1.bf16.msra.mxu1 %v3915_v61  ;;  %v3978_v60 = vcombine.high %v430_v52, %v434_v54  ;;  %v3980_v61 = vcombine.high %v431_v55, %v435_v56  ;;  %v105_v52 = vld [vmem:[#allocation6 + $0xd8] sm:$0xff]  ;;  %v3647_v56 = vcombine.low %v97_v45, %v101_v46 }
  0xcd   :  { %2495 = vmatprep.subr.bf16.mxu0 %v3922_v62  ;;  %2618 = vmatprep.subr.bf16.mxu1 %v3924_v63  ;;  %v438_v62 = vld [vmem:[#allocation6 + $0xb40] sm:$0xff]  ;;  %v109_v54 = vld [vmem:[#allocation6 + $0xf8] sm:$0xff] }
  0xce   :  { %v442_v63 = vld [vmem:[#allocation6 + $0xb60] sm:$0xff] }
  0xcf   :  { %v3985_v10 = vcombine.low %v438_v62, %v442_v63 }
  0xd0   :  { %2496 = vmatpush1.bf16.msra.mxu0 %v3921_v4  ;;  %2619 = vmatpush1.bf16.msra.mxu1 %v3923_v5  ;;  %v3986_v4 = vcombine.high %v438_v62, %v442_v63  ;;  %v3988_v5 = vcombine.high %v439_v0, %v443_v1  ;;  %v113_v62 = vld [vmem:[#allocation6 + $0x118] sm:$0xff]  ;;  %v3655_v1 = vcombine.low %v105_v52, %v109_v54 }
  0xd1   :  { %2497 = vmatprep.subr.bf16.mxu0 %v3930_v6  ;;  %2620 = vmatprep.subr.bf16.mxu1 %v3932_v7  ;;  %v446_v6 = vld [vmem:[#allocation6 + $0xb80] sm:$0xff]  ;;  %v117_v63 = vld [vmem:[#allocation6 + $0x138] sm:$0xff] }
  0xd2   :  { %v450_v7 = vld [vmem:[#allocation6 + $0xba0] sm:$0xff] }
  0xd3   :  { %v3993_v20 = vcombine.low %v446_v6, %v450_v7 }
  0xd4   :  { %2498 = vmatpush1.bf16.msra.mxu0 %v3929_v13  ;;  %2621 = vmatpush1.bf16.msra.mxu1 %v3931_v14  ;;  %v3994_v13 = vcombine.high %v446_v6, %v450_v7  ;;  %v3996_v14 = vcombine.high %v447_v8, %v451_v9  ;;  %v125_v6 = vld [vmem:[#allocation6 + $0x178] sm:$0xff]  ;;  %v3663_v8 = vcombine.low %v113_v62, %v117_v63 }
  0xd5   :  { %2499 = vmatprep.subr.bf16.mxu0 %v3938_v16  ;;  %2622 = vmatprep.subr.bf16.mxu1 %v3940_v17  ;;  %v454_v16 = vld [vmem:[#allocation6 + $0xbc0] sm:$0xff] }
  0xd6   :  { %v458_v17 = vld [vmem:[#allocation6 + $0xbe0] sm:$0xff] }
  0xd7   :  { %v4001_v30 = vcombine.low %v454_v16, %v458_v17 }
  0xd8   :  { %2500 = vmatpush1.bf16.msra.mxu0 %v3937_v22  ;;  %2623 = vmatpush1.bf16.msra.mxu1 %v3939_v23  ;;  %v4002_v22 = vcombine.high %v454_v16, %v458_v17  ;;  %v4004_v23 = vcombine.high %v455_v18, %v459_v19  ;;  %v133_v16 = vld [vmem:[#allocation6 + $0x1b8] sm:$0xff] }
  0xd9   :  { %2501 = vmatprep.subr.bf16.mxu0 %v3946_v26  ;;  %2624 = vmatprep.subr.bf16.mxu1 %v3948_v27  ;;  %v80_v26 = vld [vmem:[#allocation6 + $0x10] sm:$0xff] }
  0xda   :  { %v84_v27 = vld [vmem:[#allocation6 + $0x30] sm:$0xff] }
  0xdb   :  { %v3629_v39 = vcombine.low %v80_v26, %v84_v27 }
  0xdc   :  { %2502 = vmatpush1.bf16.msra.mxu0 %v3945_v33  ;;  %2625 = vmatpush1.bf16.msra.mxu1 %v3947_v34  ;;  %v3630_v33 = vcombine.high %v80_v26, %v84_v27  ;;  %v3632_v34 = vcombine.high %v81_v28, %v85_v29  ;;  %v141_v26 = vld [vmem:[#allocation6 + $0x1f8] sm:$0xff] }
  0xdd   :  { %2503 = vmatprep.subr.bf16.mxu0 %v3954_v15  ;;  %2626 = vmatprep.subr.bf16.mxu1 %v3956_v35  ;;  %v88_v15 = vld [vmem:[#allocation6 + $0x50] sm:$0xff] }
  0xde   :  { %v92_v35 = vld [vmem:[#allocation6 + $0x70] sm:$0xff] }
  0xdf   :  { %v3637_v24 = vcombine.low %v88_v15, %v92_v35 }
  0xe0   :  { %2504 = vmatpush1.bf16.msra.mxu0 %v3953_v40  ;;  %2627 = vmatpush1.bf16.msra.mxu1 %v3955_v41  ;;  %v3631_v40 = vcombine.low %v81_v28, %v85_v29  ;;  %v3638_v41 = vcombine.high %v88_v15, %v92_v35  ;;  %v149_v15 = vld [vmem:[#allocation6 + $0x238] sm:$0xff] }
  0xe1   :  { %2505 = vmatprep.subr.bf16.mxu0 %v3962_v42  ;;  %2628 = vmatprep.subr.bf16.mxu1 %v3964_v43  ;;  %v3640_v42 = vcombine.high %v89_v37, %v93_v38  ;;  %v96_v43 = vld [vmem:[#allocation6 + $0x90] sm:$0xff] }
  0xe2   :  { %v3645_v55 = vcombine.low %v96_v43, %v100_v44 }
  0xe4   :  { %2506 = vmatpush1.bf16.msra.mxu0 %v3961_v48  ;;  %2629 = vmatpush1.bf16.msra.mxu1 %v3963_v49  ;;  %v3646_v48 = vcombine.high %v96_v43, %v100_v44  ;;  %v3648_v49 = vcombine.high %v97_v45, %v101_v46  ;;  %v157_v43 = vld [vmem:[#allocation6 + $0x278] sm:$0xff] }
  0xe5   :  { %2507 = vmatprep.subr.bf16.mxu0 %v3970_v50  ;;  %2630 = vmatprep.subr.bf16.mxu1 %v3972_v51  ;;  %v104_v50 = vld [vmem:[#allocation6 + $0xd0] sm:$0xff] }
  0xe6   :  { %v108_v51 = vld [vmem:[#allocation6 + $0xf0] sm:$0xff] }
  0xe7   :  { %v3653_v0 = vcombine.low %v104_v50, %v108_v51 }
  0xe8   :  { %2508 = vmatpush1.bf16.msra.mxu0 %v3969_v58  ;;  %2631 = vmatpush1.bf16.msra.mxu1 %v3971_v59  ;;  %v3654_v58 = vcombine.high %v104_v50, %v108_v51  ;;  %v3656_v59 = vcombine.high %v105_v52, %v109_v54  ;;  %v165_v50 = vld [vmem:[#allocation6 + $0x2b8] sm:$0xff] }
  0xe9   :  { %2509 = vmatprep.subr.bf16.mxu0 %v3978_v60  ;;  %2632 = vmatprep.subr.bf16.mxu1 %v3980_v61  ;;  %v112_v60 = vld [vmem:[#allocation6 + $0x110] sm:$0xff] }
  0xea   :  { %v116_v61 = vld [vmem:[#allocation6 + $0x130] sm:$0xff] }
  0xeb   :  { %v3661_v7 = vcombine.low %v112_v60, %v116_v61 }
  0xec   :  { %2510 = vmatpush1.bf16.msra.mxu0 %v3977_v2  ;;  %2633 = vmatpush1.bf16.msra.mxu1 %v3979_v3  ;;  %v3662_v2 = vcombine.high %v112_v60, %v116_v61  ;;  %v120_v3 = vld [vmem:[#allocation6 + $0x150] sm:$0xff]  ;;  %v173_v60 = vld [vmem:[#allocation6 + $0x2f8] sm:$0xff] }
  0xed   :  { %2511 = vmatprep.subr.bf16.mxu0 %v3986_v4  ;;  %2634 = vmatprep.subr.bf16.mxu1 %v3988_v5  ;;  %v124_v4 = vld [vmem:[#allocation6 + $0x170] sm:$0xff]  ;;  %v121_v5 = vld [vmem:[#allocation6 + $0x158] sm:$0xff] }
  0xee   :  { %v3670_v9 = vcombine.high %v120_v3, %v124_v4  ;;  %v3669_v17 = vcombine.low %v120_v3, %v124_v4  ;;  %v3671_v18 = vcombine.low %v121_v5, %v125_v6  ;;  %v181_v3 = vld [vmem:[#allocation6 + $0x338] sm:$0xff] }
  0xf0   :  { %2512 = vmatpush1.bf16.msra.mxu0 %v3985_v10  ;;  %2635 = vmatpush1.bf16.msra.mxu1 %v3987_v11  ;;  %v3672_v10 = vcombine.high %v121_v5, %v125_v6  ;;  %v128_v11 = vld [vmem:[#allocation6 + $0x190] sm:$0xff] }
  0xf1   :  { %2513 = vmatprep.subr.bf16.mxu0 %v3994_v13  ;;  %2636 = vmatprep.subr.bf16.mxu1 %v3996_v14  ;;  %v132_v13 = vld [vmem:[#allocation6 + $0x1b0] sm:$0xff]  ;;  %v129_v14 = vld [vmem:[#allocation6 + $0x198] sm:$0xff] }
  0xf2   :  { %v3678_v19 = vcombine.high %v128_v11, %v132_v13  ;;  %v3677_v27 = vcombine.low %v128_v11, %v132_v13  ;;  %v3679_v28 = vcombine.low %v129_v14, %v133_v16  ;;  %v189_v11 = vld [vmem:[#allocation6 + $0x378] sm:$0xff] }
  0xf4   :  { %2514 = vmatpush1.bf16.msra.mxu0 %v3993_v20  ;;  %2637 = vmatpush1.bf16.msra.mxu1 %v3995_v21  ;;  %v3680_v20 = vcombine.high %v129_v14, %v133_v16  ;;  %v136_v21 = vld [vmem:[#allocation6 + $0x1d0] sm:$0xff] }
  0xf5   :  { %2515 = vmatprep.subr.bf16.mxu0 %v4002_v22  ;;  %2638 = vmatprep.subr.bf16.mxu1 %v4004_v23  ;;  %v140_v22 = vld [vmem:[#allocation6 + $0x1f0] sm:$0xff]  ;;  %v137_v23 = vld [vmem:[#allocation6 + $0x1d8] sm:$0xff] }
  0xf6   :  { %v3686_v29 = vcombine.high %v136_v21, %v140_v22  ;;  %v3685_v35 = vcombine.low %v136_v21, %v140_v22  ;;  %v3687_v37 = vcombine.low %v137_v23, %v141_v26  ;;  %v197_v21 = vld [vmem:[#allocation6 + $0x3b8] sm:$0xff] }
  0xf8   :  { %2516 = vmatpush1.bf16.msra.mxu0 %v4001_v30  ;;  %2639 = vmatpush1.bf16.msra.mxu1 %v4003_v31  ;;  %v3688_v30 = vcombine.high %v137_v23, %v141_v26  ;;  %v144_v31 = vld [vmem:[#allocation6 + $0x210] sm:$0xff] }
  0xf9   :  { %2649 = vmatprep.subr.bf16.mxu0 %v3630_v33  ;;  %2772 = vmatprep.subr.bf16.mxu1 %v3632_v34  ;;  %v148_v33 = vld [vmem:[#allocation6 + $0x230] sm:$0xff]  ;;  %v145_v34 = vld [vmem:[#allocation6 + $0x218] sm:$0xff] }
  0xfa   :  { %v3694_v38 = vcombine.high %v144_v31, %v148_v33  ;;  %v3693_v44 = vcombine.low %v144_v31, %v148_v33  ;;  %v3695_v45 = vcombine.low %v145_v34, %v149_v15  ;;  %v205_v31 = vld [vmem:[#allocation6 + $0x3f8] sm:$0xff] }
  0xfb   :  { %2518 = vmatmul.mubr.bf16.vlgmr.msra.gmra.mrb[0].mxu0 %v4467_v36  ;;  %2641 = vmatmul.mubr.bf16.vlgmr.msra.gmra.mrb[0].mxu1 %v4467_v36 }
  0xfc   :  { %2650 = vmatpush1.bf16.msra.mxu0 %v3629_v39  ;;  %2773 = vmatpush1.bf16.msra.mxu1 %v3631_v40  ;;  %v3696_v39 = vcombine.high %v145_v34, %v149_v15  ;;  %v152_v40 = vld [vmem:[#allocation6 + $0x250] sm:$0xff] }
  0xfd   :  { %2651 = vmatprep.subr.bf16.mxu0 %v3638_v41  ;;  %2774 = vmatprep.subr.bf16.mxu1 %v3640_v42  ;;  %v156_v41 = vld [vmem:[#allocation6 + $0x270] sm:$0xff]  ;;  %v153_v42 = vld [vmem:[#allocation6 + $0x258] sm:$0xff] }
  0xfe   :  { %2681 = vmatprep.mubr.bf16.mxu0 %v4433_v57  ;;  %2804 = vmatprep.mubr.bf16.mxu1 %v4433_v57  ;;  %v3664_v57 = vcombine.high %v113_v62, %v117_v63  ;;  %v3702_v46 = vcombine.high %v152_v40, %v156_v41  ;;  %v3701_v51 = vcombine.low %v152_v40, %v156_v41  ;;  %v213_v40 = vld [vmem:[#allocation6 + $0x438] sm:$0xff] }
  0xff   :  { %v3703_v52 = vcombine.low %v153_v42, %v157_v43 }
 0x100   :  { %2652 = vmatpush1.bf16.msra.mxu0 %v3637_v24  ;;  %2775 = vmatpush1.bf16.msra.mxu1 %v3639_v47  ;;  %v3704_v24 = vcombine.high %v153_v42, %v157_v43  ;;  %v160_v47 = vld [vmem:[#allocation6 + $0x290] sm:$0xff] }
 0x101   :  { %2653 = vmatprep.subr.bf16.mxu0 %v3646_v48  ;;  %2776 = vmatprep.subr.bf16.mxu1 %v3648_v49  ;;  %v164_v48 = vld [vmem:[#allocation6 + $0x2b0] sm:$0xff]  ;;  %v161_v49 = vld [vmem:[#allocation6 + $0x298] sm:$0xff] }
 0x102   :  { %v3710_v54 = vcombine.high %v160_v47, %v164_v48  ;;  %v3709_v61 = vcombine.low %v160_v47, %v164_v48  ;;  %v3711_v62 = vcombine.low %v161_v49, %v165_v50  ;;  %v221_v47 = vld [vmem:[#allocation6 + $0x478] sm:$0xff] }
 0x104   :  { %2654 = vmatpush1.bf16.msra.mxu0 %v3645_v55  ;;  %2777 = vmatpush1.bf16.msra.mxu1 %v3647_v56  ;;  %v3712_v55 = vcombine.high %v161_v49, %v165_v50  ;;  %v168_v56 = vld [vmem:[#allocation6 + $0x2d0] sm:$0xff] }
 0x105   :  { %2655 = vmatprep.subr.bf16.mxu0 %v3654_v58  ;;  %2778 = vmatprep.subr.bf16.mxu1 %v3656_v59  ;;  %v172_v58 = vld [vmem:[#allocation6 + $0x2f0] sm:$0xff]  ;;  %v169_v59 = vld [vmem:[#allocation6 + $0x2d8] sm:$0xff] }
 0x106   :  { %v3718_v63 = vcombine.high %v168_v56, %v172_v58  ;;  %v3717_v4 = vcombine.low %v168_v56, %v172_v58  ;;  %v3719_v5 = vcombine.low %v169_v59, %v173_v60  ;;  %v229_v56 = vld [vmem:[#allocation6 + $0x4b8] sm:$0xff] }
 0x108   :  { %2656 = vmatpush1.bf16.msra.mxu0 %v3653_v0  ;;  %2779 = vmatpush1.bf16.msra.mxu1 %v3655_v1  ;;  %v3720_v0 = vcombine.high %v169_v59, %v173_v60  ;;  %v176_v1 = vld [vmem:[#allocation6 + $0x310] sm:$0xff] }
 0x109   :  { %2657 = vmatprep.subr.bf16.mxu0 %v3662_v2  ;;  %2780 = vmatprep.subr.bf16.mxu1 %v3664_v57  ;;  %v180_v2 = vld [vmem:[#allocation6 + $0x330] sm:$0xff]  ;;  %v177_v57 = vld [vmem:[#allocation6 + $0x318] sm:$0xff] }
 0x10a   :  { %v3726_v6 = vcombine.high %v176_v1, %v180_v2  ;;  %v3725_v13 = vcombine.low %v176_v1, %v180_v2  ;;  %v3727_v14 = vcombine.low %v177_v57, %v181_v3  ;;  %v237_v1 = vld [vmem:[#allocation6 + $0x4f8] sm:$0xff] }
 0x10c   :  { %2658 = vmatpush1.bf16.msra.mxu0 %v3661_v7  ;;  %2781 = vmatpush1.bf16.msra.mxu1 %v3663_v8  ;;  %v3728_v7 = vcombine.high %v177_v57, %v181_v3  ;;  %v184_v8 = vld [vmem:[#allocation6 + $0x350] sm:$0xff] }
 0x10d   :  { %2659 = vmatprep.subr.bf16.mxu0 %v3670_v9  ;;  %2782 = vmatprep.subr.bf16.mxu1 %v3672_v10  ;;  %v188_v9 = vld [vmem:[#allocation6 + $0x370] sm:$0xff]  ;;  %v185_v10 = vld [vmem:[#allocation6 + $0x358] sm:$0xff] }
 0x10e   :  { %v3734_v16 = vcombine.high %v184_v8, %v188_v9  ;;  %v3733_v22 = vcombine.low %v184_v8, %v188_v9  ;;  %v3735_v23 = vcombine.low %v185_v10, %v189_v11 }
 0x110   :  { %2660 = vmatpush1.bf16.msra.mxu0 %v3669_v17  ;;  %2783 = vmatpush1.bf16.msra.mxu1 %v3671_v18  ;;  %v3736_v17 = vcombine.high %v185_v10, %v189_v11  ;;  %v192_v18 = vld [vmem:[#allocation6 + $0x390] sm:$0xff] }
 0x111   :  { %2661 = vmatprep.subr.bf16.mxu0 %v3678_v19  ;;  %2784 = vmatprep.subr.bf16.mxu1 %v3680_v20  ;;  %v196_v19 = vld [vmem:[#allocation6 + $0x3b0] sm:$0xff]  ;;  %v193_v20 = vld [vmem:[#allocation6 + $0x398] sm:$0xff] }
 0x112   :  { %v3742_v26 = vcombine.high %v192_v18, %v196_v19  ;;  %v3741_v33 = vcombine.low %v192_v18, %v196_v19  ;;  %v3743_v34 = vcombine.low %v193_v20, %v197_v21  ;;  %v248_v11 = vld [vmem:[#allocation6 + $0x550] sm:$0xff] }
 0x114   :  { %2662 = vmatpush1.bf16.msra.mxu0 %v3677_v27  ;;  %2785 = vmatpush1.bf16.msra.mxu1 %v3679_v28  ;;  %v3744_v27 = vcombine.high %v193_v20, %v197_v21  ;;  %v200_v28 = vld [vmem:[#allocation6 + $0x3d0] sm:$0xff] }
 0x115   :  { %2663 = vmatprep.subr.bf16.mxu0 %v3686_v29  ;;  %2786 = vmatprep.subr.bf16.mxu1 %v3688_v30  ;;  %v204_v29 = vld [vmem:[#allocation6 + $0x3f0] sm:$0xff]  ;;  %v201_v30 = vld [vmem:[#allocation6 + $0x3d8] sm:$0xff] }
 0x116   :  { %v3750_v15 = vcombine.high %v200_v28, %v204_v29  ;;  %v3749_v41 = vcombine.low %v200_v28, %v204_v29  ;;  %v3751_v42 = vcombine.low %v201_v30, %v205_v31  ;;  %v256_v21 = vld [vmem:[#allocation6 + $0x590] sm:$0xff] }
 0x118   :  { %2664 = vmatpush1.bf16.msra.mxu0 %v3685_v35  ;;  %2787 = vmatpush1.bf16.msra.mxu1 %v3687_v37  ;;  %v3752_v35 = vcombine.high %v201_v30, %v205_v31  ;;  %v208_v37 = vld [vmem:[#allocation6 + $0x410] sm:$0xff] }
 0x119   :  { %2665 = vmatprep.subr.bf16.mxu0 %v3694_v38  ;;  %2788 = vmatprep.subr.bf16.mxu1 %v3696_v39  ;;  %v212_v38 = vld [vmem:[#allocation6 + $0x430] sm:$0xff]  ;;  %v209_v39 = vld [vmem:[#allocation6 + $0x418] sm:$0xff] }
 0x11a   :  { %v3758_v43 = vcombine.high %v208_v37, %v212_v38  ;;  %v3757_v48 = vcombine.low %v208_v37, %v212_v38  ;;  %v3759_v49 = vcombine.low %v209_v39, %v213_v40  ;;  %v264_v31 = vld [vmem:[#allocation6 + $0x5d0] sm:$0xff] }
 0x11c   :  { %2666 = vmatpush1.bf16.msra.mxu0 %v3693_v44  ;;  %2789 = vmatpush1.bf16.msra.mxu1 %v3695_v45  ;;  %v3760_v44 = vcombine.high %v209_v39, %v213_v40  ;;  %v216_v45 = vld [vmem:[#allocation6 + $0x450] sm:$0xff] }
 0x11d   :  { %2667 = vmatprep.subr.bf16.mxu0 %v3702_v46  ;;  %2790 = vmatprep.subr.bf16.mxu1 %v3704_v24  ;;  %v220_v46 = vld [vmem:[#allocation6 + $0x470] sm:$0xff]  ;;  %v217_v24 = vld [vmem:[#allocation6 + $0x458] sm:$0xff] }
 0x11e   :  { %v3766_v50 = vcombine.high %v216_v45, %v220_v46  ;;  %v3765_v58 = vcombine.low %v216_v45, %v220_v46  ;;  %v3767_v59 = vcombine.low %v217_v24, %v221_v47  ;;  %v272_v40 = vld [vmem:[#allocation6 + $0x610] sm:$0xff] }
 0x120   :  { %2668 = vmatpush1.bf16.msra.mxu0 %v3701_v51  ;;  %2791 = vmatpush1.bf16.msra.mxu1 %v3703_v52  ;;  %v3768_v51 = vcombine.high %v217_v24, %v221_v47  ;;  %v224_v52 = vld [vmem:[#allocation6 + $0x490] sm:$0xff] }
 0x121   :  { %2669 = vmatprep.subr.bf16.mxu0 %v3710_v54  ;;  %2792 = vmatprep.subr.bf16.mxu1 %v3712_v55  ;;  %v228_v54 = vld [vmem:[#allocation6 + $0x4b0] sm:$0xff]  ;;  %v225_v55 = vld [vmem:[#allocation6 + $0x498] sm:$0xff] }
 0x122   :  { %v3774_v60 = vcombine.high %v224_v52, %v228_v54  ;;  %v3773_v2 = vcombine.low %v224_v52, %v228_v54  ;;  %v280_v47 = vld [vmem:[#allocation6 + $0x650] sm:$0xff] }
 0x124   :  { %2670 = vmatpush1.bf16.msra.mxu0 %v3709_v61  ;;  %2793 = vmatpush1.bf16.msra.mxu1 %v3711_v62  ;;  %v3776_v61 = vcombine.high %v225_v55, %v229_v56  ;;  %v232_v62 = vld [vmem:[#allocation6 + $0x4d0] sm:$0xff] }
 0x125   :  { %2671 = vmatprep.subr.bf16.mxu0 %v3718_v63  ;;  %2794 = vmatprep.subr.bf16.mxu1 %v3720_v0  ;;  %v236_v63 = vld [vmem:[#allocation6 + $0x4f0] sm:$0xff]  ;;  %v233_v0 = vld [vmem:[#allocation6 + $0x4d8] sm:$0xff] }
 0x126   :  { %v3782_v57 = vcombine.high %v232_v62, %v236_v63  ;;  %v3784_v3 = vcombine.high %v233_v0, %v237_v1  ;;  %v3781_v8 = vcombine.low %v232_v62, %v236_v63  ;;  %v3783_v9 = vcombine.low %v233_v0, %v237_v1  ;;  %v296_v1 = vld [vmem:[#allocation6 + $0x6d0] sm:$0xff] }
 0x128   :  { %2672 = vmatpush1.bf16.msra.mxu0 %v3717_v4  ;;  %2795 = vmatpush1.bf16.msra.mxu1 %v3719_v5  ;;  %v240_v4 = vld [vmem:[#allocation6 + $0x510] sm:$0xff] }
 0x129   :  { %2673 = vmatprep.subr.bf16.mxu0 %v3726_v6  ;;  %2796 = vmatprep.subr.bf16.mxu1 %v3728_v7  ;;  %v244_v5 = vld [vmem:[#allocation6 + $0x530] sm:$0xff]  ;;  %v241_v6 = vld [vmem:[#allocation6 + $0x518] sm:$0xff] }
 0x12a   :  { %v245_v7 = vld [vmem:[#allocation6 + $0x538] sm:$0xff]  ;;  %v3790_v10 = vcombine.high %v240_v4, %v244_v5 }
 0x12b   :  { %v3791_v18 = vcombine.low %v241_v6, %v245_v7 }
 0x12c   :  { %2674 = vmatpush1.bf16.msra.mxu0 %v3725_v13  ;;  %2797 = vmatpush1.bf16.msra.mxu1 %v3727_v14  ;;  %v252_v13 = vld [vmem:[#allocation6 + $0x570] sm:$0xff]  ;;  %v249_v14 = vld [vmem:[#allocation6 + $0x558] sm:$0xff] }
 0x12d   :  { %2675 = vmatprep.subr.bf16.mxu0 %v3734_v16  ;;  %2798 = vmatprep.subr.bf16.mxu1 %v3736_v17  ;;  %v253_v16 = vld [vmem:[#allocation6 + $0x578] sm:$0xff]  ;;  %v3789_v17 = vcombine.low %v240_v4, %v244_v5  ;;  %v3798_v19 = vcombine.high %v248_v11, %v252_v13 }
 0x12e   :  { %v3800_v20 = vcombine.high %v249_v14, %v253_v16  ;;  %v3799_v28 = vcombine.low %v249_v14, %v253_v16  ;;  %v312_v16 = vld [vmem:[#allocation6 + $0x750] sm:$0xff] }
 0x130   :  { %2676 = vmatpush1.bf16.msra.mxu0 %v3733_v22  ;;  %2799 = vmatpush1.bf16.msra.mxu1 %v3735_v23  ;;  %v260_v22 = vld [vmem:[#allocation6 + $0x5b0] sm:$0xff]  ;;  %v257_v23 = vld [vmem:[#allocation6 + $0x598] sm:$0xff] }
 0x131   :  { %2677 = vmatprep.subr.bf16.mxu0 %v3742_v26  ;;  %2800 = vmatprep.subr.bf16.mxu1 %v3744_v27  ;;  %v261_v26 = vld [vmem:[#allocation6 + $0x5b8] sm:$0xff]  ;;  %v3797_v27 = vcombine.low %v248_v11, %v252_v13  ;;  %v3806_v29 = vcombine.high %v256_v21, %v260_v22 }
 0x132   :  { %v3808_v30 = vcombine.high %v257_v23, %v261_v26  ;;  %v3807_v37 = vcombine.low %v257_v23, %v261_v26  ;;  %v320_v26 = vld [vmem:[#allocation6 + $0x790] sm:$0xff] }
 0x134   :  { %2678 = vmatpush1.bf16.msra.mxu0 %v3741_v33  ;;  %2801 = vmatpush1.bf16.msra.mxu1 %v3743_v34  ;;  %v268_v33 = vld [vmem:[#allocation6 + $0x5f0] sm:$0xff]  ;;  %v265_v34 = vld [vmem:[#allocation6 + $0x5d8] sm:$0xff] }
 0x135   :  { %2679 = vmatprep.subr.bf16.mxu0 %v3750_v15  ;;  %2802 = vmatprep.subr.bf16.mxu1 %v3752_v35  ;;  %v269_v15 = vld [vmem:[#allocation6 + $0x5f8] sm:$0xff]  ;;  %v3805_v35 = vcombine.low %v256_v21, %v260_v22  ;;  %v3814_v38 = vcombine.high %v264_v31, %v268_v33 }
 0x136   :  { %v3816_v39 = vcombine.high %v265_v34, %v269_v15  ;;  %v3815_v45 = vcombine.low %v265_v34, %v269_v15  ;;  %v328_v15 = vld [vmem:[#allocation6 + $0x7d0] sm:$0xff] }
 0x138   :  { %2680 = vmatpush1.bf16.msra.mxu0 %v3749_v41  ;;  %2803 = vmatpush1.bf16.msra.mxu1 %v3751_v42  ;;  %v276_v41 = vld [vmem:[#allocation6 + $0x630] sm:$0xff]  ;;  %v273_v42 = vld [vmem:[#allocation6 + $0x618] sm:$0xff] }
 0x139   :  { %2690 = vmatprep.subr.bf16.mxu0 %v3758_v43  ;;  %2813 = vmatprep.subr.bf16.mxu1 %v3760_v44  ;;  %v277_v43 = vld [vmem:[#allocation6 + $0x638] sm:$0xff]  ;;  %v3813_v44 = vcombine.low %v264_v31, %v268_v33  ;;  %v3822_v46 = vcombine.high %v272_v40, %v276_v41 }
 0x13a   :  { %v3824_v24 = vcombine.high %v273_v42, %v277_v43  ;;  %v3823_v52 = vcombine.low %v273_v42, %v277_v43  ;;  %v336_v43 = vld [vmem:[#allocation6 + $0x810] sm:$0xff] }
 0x13b   :  { %2682 = vmatmul.mubr.bf16.vlgmr.msra.gmra.mrb[4].mxu0 %v4439_v12  ;;  %2805 = vmatmul.mubr.bf16.vlgmr.msra.gmra.mrb[4].mxu1 %v4439_v12  ;;  %v3775_v12 = vcombine.low %v225_v55, %v229_v56  ;;  %v288_v56 = vld [vmem:[#allocation6 + $0x690] sm:$0xff] }
 0x13c   :  { %2691 = vmatpush1.bf16.msra.mxu0 %v3757_v48  ;;  %2814 = vmatpush1.bf16.msra.mxu1 %v3759_v49  ;;  %v284_v48 = vld [vmem:[#allocation6 + $0x670] sm:$0xff]  ;;  %v281_v49 = vld [vmem:[#allocation6 + $0x658] sm:$0xff] }
 0x13d   :  { %2692 = vmatprep.subr.bf16.mxu0 %v3766_v50  ;;  %2815 = vmatprep.subr.bf16.mxu1 %v3768_v51  ;;  %v285_v50 = vld [vmem:[#allocation6 + $0x678] sm:$0xff]  ;;  %v3821_v51 = vcombine.low %v272_v40, %v276_v41  ;;  %v3830_v54 = vcombine.high %v280_v47, %v284_v48 }
 0x13e   :  { %2722 = vmatprep.mubr.bf16.mxu0 %v4445_v53  ;;  %2845 = vmatprep.mubr.bf16.mxu1 %v4445_v53  ;;  %v3792_v53 = vcombine.high %v241_v6, %v245_v7  ;;  %v3832_v55 = vcombine.high %v281_v49, %v285_v50  ;;  %v3831_v62 = vcombine.low %v281_v49, %v285_v50  ;;  %v304_v7 = vld [vmem:[#allocation6 + $0x710] sm:$0xff] }
 0x13f   :  { %v344_v50 = vld [vmem:[#allocation6 + $0x850] sm:$0xff] }
 0x140   :  { %2693 = vmatpush1.bf16.msra.mxu0 %v3765_v58  ;;  %2816 = vmatpush1.bf16.msra.mxu1 %v3767_v59  ;;  %v292_v58 = vld [vmem:[#allocation6 + $0x6b0] sm:$0xff]  ;;  %v289_v59 = vld [vmem:[#allocation6 + $0x698] sm:$0xff] }
 0x141   :  { %2694 = vmatprep.subr.bf16.mxu0 %v3774_v60  ;;  %2817 = vmatprep.subr.bf16.mxu1 %v3776_v61  ;;  %v293_v60 = vld [vmem:[#allocation6 + $0x6b8] sm:$0xff]  ;;  %v3829_v61 = vcombine.low %v280_v47, %v284_v48  ;;  %v3838_v63 = vcombine.high %v288_v56, %v292_v58 }
 0x142   :  { %v3840_v0 = vcombine.high %v289_v59, %v293_v60  ;;  %v3839_v4 = vcombine.low %v289_v59, %v293_v60  ;;  %v352_v60 = vld [vmem:[#allocation6 + $0x890] sm:$0xff] }
 0x144   :  { %2695 = vmatpush1.bf16.msra.mxu0 %v3773_v2  ;;  %2818 = vmatpush1.bf16.msra.mxu1 %v3775_v12  ;;  %v300_v2 = vld [vmem:[#allocation6 + $0x6f0] sm:$0xff]  ;;  %v297_v12 = vld [vmem:[#allocation6 + $0x6d8] sm:$0xff] }
 0x145   :  { %2696 = vmatprep.subr.bf16.mxu0 %v3782_v57  ;;  %2819 = vmatprep.subr.bf16.mxu1 %v3784_v3  ;;  %v301_v57 = vld [vmem:[#allocation6 + $0x6f8] sm:$0xff]  ;;  %v3837_v3 = vcombine.low %v288_v56, %v292_v58  ;;  %v3846_v5 = vcombine.high %v296_v1, %v300_v2 }
 0x146   :  { %v3848_v6 = vcombine.high %v297_v12, %v301_v57  ;;  %v3847_v11 = vcombine.low %v297_v12, %v301_v57  ;;  %v360_v57 = vld [vmem:[#allocation6 + $0x8d0] sm:$0xff] }
 0x148   :  { %2697 = vmatpush1.bf16.msra.mxu0 %v3781_v8  ;;  %2820 = vmatpush1.bf16.msra.mxu1 %v3783_v9  ;;  %v308_v8 = vld [vmem:[#allocation6 + $0x730] sm:$0xff]  ;;  %v305_v9 = vld [vmem:[#allocation6 + $0x718] sm:$0xff] }
 0x149   :  { %2698 = vmatprep.subr.bf16.mxu0 %v3790_v10  ;;  %2821 = vmatprep.subr.bf16.mxu1 %v3792_v53  ;;  %v309_v10 = vld [vmem:[#allocation6 + $0x738] sm:$0xff]  ;;  %v3845_v53 = vcombine.low %v296_v1, %v300_v2  ;;  %v3854_v13 = vcombine.high %v304_v7, %v308_v8 }
 0x14a   :  { %v3856_v14 = vcombine.high %v305_v9, %v309_v10  ;;  %v3855_v21 = vcombine.low %v305_v9, %v309_v10  ;;  %v368_v9 = vld [vmem:[#allocation6 + $0x910] sm:$0xff] }
 0x14b   :  { %v372_v10 = vld [vmem:[#allocation6 + $0x930] sm:$0xff] }
 0x14c   :  { %2699 = vmatpush1.bf16.msra.mxu0 %v3789_v17  ;;  %2822 = vmatpush1.bf16.msra.mxu1 %v3791_v18  ;;  %v316_v17 = vld [vmem:[#allocation6 + $0x770] sm:$0xff]  ;;  %v313_v18 = vld [vmem:[#allocation6 + $0x758] sm:$0xff] }
 0x14d   :  { %2700 = vmatprep.subr.bf16.mxu0 %v3798_v19  ;;  %2823 = vmatprep.subr.bf16.mxu1 %v3800_v20  ;;  %v317_v19 = vld [vmem:[#allocation6 + $0x778] sm:$0xff]  ;;  %v3853_v20 = vcombine.low %v304_v7, %v308_v8  ;;  %v3862_v22 = vcombine.high %v312_v16, %v316_v17 }
 0x14e   :  { %v3864_v23 = vcombine.high %v313_v18, %v317_v19  ;;  %v3863_v31 = vcombine.low %v313_v18, %v317_v19  ;;  %v380_v18 = vld [vmem:[#allocation6 + $0x970] sm:$0xff]  ;;  %v377_v19 = vld [vmem:[#allocation6 + $0x958] sm:$0xff] }
 0x150   :  { %2701 = vmatpush1.bf16.msra.mxu0 %v3797_v27  ;;  %2824 = vmatpush1.bf16.msra.mxu1 %v3799_v28  ;;  %v324_v27 = vld [vmem:[#allocation6 + $0x7b0] sm:$0xff]  ;;  %v321_v28 = vld [vmem:[#allocation6 + $0x798] sm:$0xff] }
 0x151   :  { %2702 = vmatprep.subr.bf16.mxu0 %v3806_v29  ;;  %2825 = vmatprep.subr.bf16.mxu1 %v3808_v30  ;;  %v325_v29 = vld [vmem:[#allocation6 + $0x7b8] sm:$0xff]  ;;  %v3861_v30 = vcombine.low %v312_v16, %v316_v17  ;;  %v3870_v33 = vcombine.high %v320_v26, %v324_v27  ;;  %v3918_v16 = vcombine.high %v368_v9, %v372_v10  ;;  %v376_v17 = vld [vmem:[#allocation6 + $0x950] sm:$0xff] }
 0x152   :  { %v3872_v34 = vcombine.high %v321_v28, %v325_v29  ;;  %v3871_v40 = vcombine.low %v321_v28, %v325_v29  ;;  %v388_v28 = vld [vmem:[#allocation6 + $0x9b0] sm:$0xff]  ;;  %v385_v29 = vld [vmem:[#allocation6 + $0x998] sm:$0xff] }
 0x154   :  { %2703 = vmatpush1.bf16.msra.mxu0 %v3805_v35  ;;  %2826 = vmatpush1.bf16.msra.mxu1 %v3807_v37  ;;  %v332_v35 = vld [vmem:[#allocation6 + $0x7f0] sm:$0xff]  ;;  %v329_v37 = vld [vmem:[#allocation6 + $0x7d8] sm:$0xff] }
 0x155   :  { %2704 = vmatprep.subr.bf16.mxu0 %v3814_v38  ;;  %2827 = vmatprep.subr.bf16.mxu1 %v3816_v39  ;;  %v333_v38 = vld [vmem:[#allocation6 + $0x7f8] sm:$0xff]  ;;  %v3869_v39 = vcombine.low %v320_v26, %v324_v27  ;;  %v3878_v41 = vcombine.high %v328_v15, %v332_v35  ;;  %v384_v27 = vld [vmem:[#allocation6 + $0x990] sm:$0xff] }
 0x156   :  { %v3880_v42 = vcombine.high %v329_v37, %v333_v38  ;;  %v3879_v47 = vcombine.low %v329_v37, %v333_v38  ;;  %v396_v37 = vld [vmem:[#allocation6 + $0x9f0] sm:$0xff]  ;;  %v393_v38 = vld [vmem:[#allocation6 + $0x9d8] sm:$0xff] }
 0x158   :  { %2705 = vmatpush1.bf16.msra.mxu0 %v3813_v44  ;;  %2828 = vmatpush1.bf16.msra.mxu1 %v3815_v45  ;;  %v340_v44 = vld [vmem:[#allocation6 + $0x830] sm:$0xff]  ;;  %v337_v45 = vld [vmem:[#allocation6 + $0x818] sm:$0xff] }
 0x159   :  { %2706 = vmatprep.subr.bf16.mxu0 %v3822_v46  ;;  %2829 = vmatprep.subr.bf16.mxu1 %v3824_v24  ;;  %v341_v46 = vld [vmem:[#allocation6 + $0x838] sm:$0xff]  ;;  %v3877_v24 = vcombine.low %v328_v15, %v332_v35  ;;  %v3886_v48 = vcombine.high %v336_v43, %v340_v44  ;;  %v392_v35 = vld [vmem:[#allocation6 + $0x9d0] sm:$0xff] }
 0x15a   :  { %v3888_v49 = vcombine.high %v337_v45, %v341_v46  ;;  %v3887_v56 = vcombine.low %v337_v45, %v341_v46  ;;  %v404_v45 = vld [vmem:[#allocation6 + $0xa30] sm:$0xff]  ;;  %v401_v46 = vld [vmem:[#allocation6 + $0xa18] sm:$0xff] }
 0x15c   :  { %2707 = vmatpush1.bf16.msra.mxu0 %v3821_v51  ;;  %2830 = vmatpush1.bf16.msra.mxu1 %v3823_v52  ;;  %v348_v51 = vld [vmem:[#allocation6 + $0x870] sm:$0xff]  ;;  %v345_v52 = vld [vmem:[#allocation6 + $0x858] sm:$0xff] }
 0x15d   :  { %2708 = vmatprep.subr.bf16.mxu0 %v3830_v54  ;;  %2831 = vmatprep.subr.bf16.mxu1 %v3832_v55  ;;  %v349_v54 = vld [vmem:[#allocation6 + $0x878] sm:$0xff]  ;;  %v3885_v55 = vcombine.low %v336_v43, %v340_v44  ;;  %v3894_v58 = vcombine.high %v344_v50, %v348_v51  ;;  %v400_v44 = vld [vmem:[#allocation6 + $0xa10] sm:$0xff] }
 0x15e   :  { %v3896_v59 = vcombine.high %v345_v52, %v349_v54  ;;  %v3895_v1 = vcombine.low %v345_v52, %v349_v54  ;;  %v412_v52 = vld [vmem:[#allocation6 + $0xa70] sm:$0xff]  ;;  %v409_v54 = vld [vmem:[#allocation6 + $0xa58] sm:$0xff] }
 0x160   :  { %2709 = vmatpush1.bf16.msra.mxu0 %v3829_v61  ;;  %2832 = vmatpush1.bf16.msra.mxu1 %v3831_v62  ;;  %v356_v61 = vld [vmem:[#allocation6 + $0x8b0] sm:$0xff]  ;;  %v353_v62 = vld [vmem:[#allocation6 + $0x898] sm:$0xff] }
 0x161   :  { %2710 = vmatprep.subr.bf16.mxu0 %v3838_v63  ;;  %2833 = vmatprep.subr.bf16.mxu1 %v3840_v0  ;;  %v357_v63 = vld [vmem:[#allocation6 + $0x8b8] sm:$0xff]  ;;  %v3893_v0 = vcombine.low %v344_v50, %v348_v51  ;;  %v3902_v2 = vcombine.high %v352_v60, %v356_v61  ;;  %v408_v51 = vld [vmem:[#allocation6 + $0xa50] sm:$0xff] }
 0x162   :  { %v3904_v12 = vcombine.high %v353_v62, %v357_v63 }
 0x164   :  { %2711 = vmatpush1.bf16.msra.mxu0 %v3837_v3  ;;  %2834 = vmatpush1.bf16.msra.mxu1 %v3839_v4  ;;  %v364_v3 = vld [vmem:[#allocation6 + $0x8f0] sm:$0xff]  ;;  %v361_v4 = vld [vmem:[#allocation6 + $0x8d8] sm:$0xff] }
 0x165   :  { %2712 = vmatprep.subr.bf16.mxu0 %v3846_v5  ;;  %2835 = vmatprep.subr.bf16.mxu1 %v3848_v6  ;;  %v365_v5 = vld [vmem:[#allocation6 + $0x8f8] sm:$0xff]  ;;  %v3901_v6 = vcombine.low %v352_v60, %v356_v61  ;;  %v3910_v7 = vcombine.high %v360_v57, %v364_v3  ;;  %v416_v61 = vld [vmem:[#allocation6 + $0xa90] sm:$0xff] }
 0x166   :  { %v3912_v8 = vcombine.high %v361_v4, %v365_v5 }
 0x168   :  { %2713 = vmatpush1.bf16.msra.mxu0 %v3845_v53  ;;  %2836 = vmatpush1.bf16.msra.mxu1 %v3847_v11  ;;  %v369_v53 = vld [vmem:[#allocation6 + $0x918] sm:$0xff] }
 0x169   :  { %2714 = vmatprep.subr.bf16.mxu0 %v3854_v13  ;;  %2837 = vmatprep.subr.bf16.mxu1 %v3856_v14  ;;  %v373_v11 = vld [vmem:[#allocation6 + $0x938] sm:$0xff]  ;;  %v3909_v13 = vcombine.low %v360_v57, %v364_v3  ;;  %v3911_v14 = vcombine.low %v361_v4, %v365_v5  ;;  %v424_v3 = vld [vmem:[#allocation6 + $0xad0] sm:$0xff] }
 0x16a   :  { %v428_v4 = vld [vmem:[#allocation6 + $0xaf0] sm:$0xff]  ;;  %v425_v5 = vld [vmem:[#allocation6 + $0xad8] sm:$0xff] }
 0x16c   :  { %2715 = vmatpush1.bf16.msra.mxu0 %v3853_v20  ;;  %2838 = vmatpush1.bf16.msra.mxu1 %v3855_v21  ;;  %v381_v20 = vld [vmem:[#allocation6 + $0x978] sm:$0xff]  ;;  %v3917_v21 = vcombine.low %v368_v9, %v372_v10  ;;  %v432_v10 = vld [vmem:[#allocation6 + $0xb10] sm:$0xff] }
 0x16d   :  { %2716 = vmatprep.subr.bf16.mxu0 %v3862_v22  ;;  %2839 = vmatprep.subr.bf16.mxu1 %v3864_v23  ;;  %v3919_v22 = vcombine.low %v369_v53, %v373_v11  ;;  %v3926_v23 = vcombine.high %v376_v17, %v380_v18  ;;  %v3928_v26 = vcombine.high %v377_v19, %v381_v20 }
 0x170   :  { %2717 = vmatpush1.bf16.msra.mxu0 %v3861_v30  ;;  %2840 = vmatpush1.bf16.msra.mxu1 %v3863_v31  ;;  %v389_v30 = vld [vmem:[#allocation6 + $0x9b8] sm:$0xff]  ;;  %v3925_v31 = vcombine.low %v376_v17, %v380_v18  ;;  %v440_v18 = vld [vmem:[#allocation6 + $0xb50] sm:$0xff] }
 0x171   :  { %2718 = vmatprep.subr.bf16.mxu0 %v3870_v33  ;;  %2841 = vmatprep.subr.bf16.mxu1 %v3872_v34  ;;  %v3927_v33 = vcombine.low %v377_v19, %v381_v20  ;;  %v3934_v34 = vcombine.high %v384_v27, %v388_v28  ;;  %v3936_v15 = vcombine.high %v385_v29, %v389_v30  ;;  %v444_v19 = vld [vmem:[#allocation6 + $0xb70] sm:$0xff]  ;;  %v441_v20 = vld [vmem:[#allocation6 + $0xb58] sm:$0xff] }
 0x174   :  { %2719 = vmatpush1.bf16.msra.mxu0 %v3869_v39  ;;  %2842 = vmatpush1.bf16.msra.mxu1 %v3871_v40  ;;  %v397_v39 = vld [vmem:[#allocation6 + $0x9f8] sm:$0xff]  ;;  %v3933_v40 = vcombine.low %v384_v27, %v388_v28  ;;  %v448_v28 = vld [vmem:[#allocation6 + $0xb90] sm:$0xff] }
 0x175   :  { %2720 = vmatprep.subr.bf16.mxu0 %v3878_v41  ;;  %2843 = vmatprep.subr.bf16.mxu1 %v3880_v42  ;;  %v3935_v41 = vcombine.low %v385_v29, %v389_v30  ;;  %v3942_v42 = vcombine.high %v392_v35, %v396_v37  ;;  %v3944_v43 = vcombine.high %v393_v38, %v397_v39  ;;  %v452_v29 = vld [vmem:[#allocation6 + $0xbb0] sm:$0xff]  ;;  %v449_v30 = vld [vmem:[#allocation6 + $0xb98] sm:$0xff] }
 0x178   :  { %2721 = vmatpush1.bf16.msra.mxu0 %v3877_v24  ;;  %2844 = vmatpush1.bf16.msra.mxu1 %v3879_v47  ;;  %v405_v24 = vld [vmem:[#allocation6 + $0xa38] sm:$0xff]  ;;  %v3941_v47 = vcombine.low %v392_v35, %v396_v37  ;;  %v456_v37 = vld [vmem:[#allocation6 + $0xbd0] sm:$0xff] }
 0x179   :  { %2731 = vmatprep.subr.bf16.mxu0 %v3886_v48  ;;  %2854 = vmatprep.subr.bf16.mxu1 %v3888_v49  ;;  %v3943_v48 = vcombine.low %v393_v38, %v397_v39  ;;  %v3950_v49 = vcombine.high %v400_v44, %v404_v45  ;;  %v3952_v50 = vcombine.high %v401_v46, %v405_v24  ;;  %v460_v38 = vld [vmem:[#allocation6 + $0xbf0] sm:$0xff]  ;;  %v457_v39 = vld [vmem:[#allocation6 + $0xbd8] sm:$0xff] }
 0x17b   :  { %2723 = vmatmul.mubr.bf16.vlgmr.msra.gmra.mrb[4].mxu0 %v4455_v25  ;;  %2846 = vmatmul.mubr.bf16.vlgmr.msra.gmra.mrb[4].mxu1 %v4455_v25  ;;  %v3903_v25 = vcombine.low %v353_v62, %v357_v63  ;;  %v420_v62 = vld [vmem:[#allocation6 + $0xab0] sm:$0xff]  ;;  %v417_v63 = vld [vmem:[#allocation6 + $0xa98] sm:$0xff] }
 0x17c   :  { %2732 = vmatpush1.bf16.msra.mxu0 %v3885_v55  ;;  %2855 = vmatpush1.bf16.msra.mxu1 %v3887_v56  ;;  %v413_v55 = vld [vmem:[#allocation6 + $0xa78] sm:$0xff]  ;;  %v3949_v56 = vcombine.low %v400_v44, %v404_v45  ;;  %v4005_v45 = vcombine.low %v456_v37, %v460_v38 }
 0x17d   :  { %2733 = vmatprep.subr.bf16.mxu0 %v3894_v58  ;;  %2856 = vmatprep.subr.bf16.mxu1 %v3896_v59  ;;  %v3951_v58 = vcombine.low %v401_v46, %v405_v24  ;;  %v3958_v59 = vcombine.high %v408_v51, %v412_v52  ;;  %v3960_v60 = vcombine.high %v409_v54, %v413_v55  ;;  %v4207_v24 = vld [vmem:[#allocation8 + $0x40] sm:$0xff]  }
 0x17e   :  { %2763 = vmatprep.mubr.bf16.mxu0 %v4459_v32  ;;  %2886 = vmatprep.mubr.bf16.mxu1 %v4459_v32  ;;  %v3920_v32 = vcombine.high %v369_v53, %v373_v11  ;;  %v436_v53 = vld [vmem:[#allocation6 + $0xb30] sm:$0xff]  ;;  %v433_v11 = vld [vmem:[#allocation6 + $0xb18] sm:$0xff] }
 0x180   :  { %2734 = vmatpush1.bf16.msra.mxu0 %v3893_v0  ;;  %2857 = vmatpush1.bf16.msra.mxu1 %v3895_v1  ;;  %v421_v0 = vld [vmem:[#allocation6 + $0xab8] sm:$0xff]  ;;  %v3957_v1 = vcombine.low %v408_v51, %v412_v52  ;;  %v4212_v51 = vld [vmem:[#allocation8 + $0xc8] sm:$0xff]  }
 0x181   :  { %2735 = vmatprep.subr.bf16.mxu0 %v3902_v2  ;;  %2858 = vmatprep.subr.bf16.mxu1 %v3904_v12  ;;  %v3959_v2 = vcombine.low %v409_v54, %v413_v55  ;;  %v3966_v12 = vcombine.high %v416_v61, %v420_v62  ;;  %v3968_v57 = vcombine.high %v417_v63, %v421_v0  ;;  %v4213_v52 = vld [vmem:[#allocation8 + $0x8] sm:$0xff]   ;;  %v4215_v55 = vld [vmem:[#allocation8 + $0x50] sm:$0xff]  }
 0x182   :  { %v4214_v54 = vld [vmem:[#allocation8 + $0x88] sm:$0xff]  }
 0x184   :  { %2736 = vmatpush1.bf16.msra.mxu0 %v3901_v6  ;;  %2859 = vmatpush1.bf16.msra.mxu1 %v3903_v25  ;;  %v429_v6 = vld [vmem:[#allocation6 + $0xaf8] sm:$0xff]  ;;  %v3965_v25 = vcombine.low %v416_v61, %v420_v62 }
 0x185   :  { %2737 = vmatprep.subr.bf16.mxu0 %v3910_v7  ;;  %2860 = vmatprep.subr.bf16.mxu1 %v3912_v8  ;;  %v3967_v7 = vcombine.low %v417_v63, %v421_v0  ;;  %v3974_v8 = vcombine.high %v424_v3, %v428_v4  ;;  %v3976_v9 = vcombine.high %v425_v5, %v429_v6  ;;  %v4220_v61 = vld [vmem:[#allocation8 + $0xd8] sm:$0xff]   ;;  %v4223_v63 = vld [vmem:[#allocation8 + $0x60] sm:$0xff]  }
 0x186   :  { %v4221_v62 = vld [vmem:[#allocation8 + $0x18] sm:$0xff]   ;;  %v4224_v0 = vld [vmem:[#allocation8 + $0xe0] sm:$0xff]  }
 0x188   :  { %2738 = vmatpush1.bf16.msra.mxu0 %v3909_v13  ;;  %2861 = vmatpush1.bf16.msra.mxu1 %v3911_v14  ;;  %v437_v13 = vld [vmem:[#allocation6 + $0xb38] sm:$0xff]  ;;  %v3973_v14 = vcombine.low %v424_v3, %v428_v4  ;;  %v4229_v3 = vld [vmem:[#allocation8 + $0x28] sm:$0xff]  }
 0x189   :  { %2739 = vmatprep.subr.bf16.mxu0 %v3918_v16  ;;  %2862 = vmatprep.subr.bf16.mxu1 %v3920_v32  ;;  %v3975_v16 = vcombine.low %v425_v5, %v429_v6  ;;  %v3982_v32 = vcombine.high %v432_v10, %v436_v53  ;;  %v3984_v17 = vcombine.high %v433_v11, %v437_v13  ;;  %v4230_v4 = vld [vmem:[#allocation8 + $0xa8] sm:$0xff]   ;;  %v4231_v5 = vld [vmem:[#allocation8 + $0x70] sm:$0xff]  }
 0x18c   :  { %2740 = vmatpush1.bf16.msra.mxu0 %v3917_v21  ;;  %2863 = vmatpush1.bf16.msra.mxu1 %v3919_v22  ;;  %v445_v21 = vld [vmem:[#allocation6 + $0xb78] sm:$0xff]  ;;  %v3981_v22 = vcombine.low %v432_v10, %v436_v53 }
 0x18d   :  { %2741 = vmatprep.subr.bf16.mxu0 %v3926_v23  ;;  %2864 = vmatprep.subr.bf16.mxu1 %v3928_v26  ;;  %v3983_v23 = vcombine.low %v433_v11, %v437_v13  ;;  %v3990_v26 = vcombine.high %v440_v18, %v444_v19  ;;  %v3992_v27 = vcombine.high %v441_v20, %v445_v21  ;;  %v4233_v11 = vld [vmem:[#allocation8 + $0x30] sm:$0xff]  }
 0x190   :  { %2742 = vmatpush1.bf16.msra.mxu0 %v3925_v31  ;;  %2865 = vmatpush1.bf16.msra.mxu1 %v3927_v33  ;;  %v453_v31 = vld [vmem:[#allocation6 + $0xbb8] sm:$0xff]  ;;  %v3989_v33 = vcombine.low %v440_v18, %v444_v19 }
 0x191   :  { %2743 = vmatprep.subr.bf16.mxu0 %v3934_v34  ;;  %2866 = vmatprep.subr.bf16.mxu1 %v3936_v15  ;;  %v3991_v34 = vcombine.low %v441_v20, %v445_v21  ;;  %v3998_v15 = vcombine.high %v448_v28, %v452_v29  ;;  %v4000_v35 = vcombine.high %v449_v30, %v453_v31  ;;  %v4236_v19 = vld [vmem:[#allocation8 + $0xf8] sm:$0xff]  }
 0x192   :  { %v4237_v20 = vld [vmem:[#allocation8 + $0x38] sm:$0xff]  }
 0x193   :  { %v4238_v21 = vld [vmem:[#allocation8 + $0xb8] sm:$0xff]  }
 0x194   :  { %2744 = vmatpush1.bf16.msra.mxu0 %v3933_v40  ;;  %2867 = vmatpush1.bf16.msra.mxu1 %v3935_v41  ;;  %v461_v40 = vld [vmem:[#allocation6 + $0xbf8] sm:$0xff]  ;;  %v3997_v41 = vcombine.low %v448_v28, %v452_v29  ;;  %v4242_v28 = vld [vmem:[#allocation8 + $0x180] sm:$0xff]   ;;  %v4243_v29 = vld [vmem:[#allocation8 + $0x148] sm:$0xff]  }
 0x195   :  { %2745 = vmatprep.subr.bf16.mxu0 %v3942_v42  ;;  %2868 = vmatprep.subr.bf16.mxu1 %v3944_v43  ;;  %v3999_v42 = vcombine.low %v449_v30, %v453_v31  ;;  %v4006_v43 = vcombine.high %v456_v37, %v460_v38  ;;  %v4008_v44 = vcombine.high %v457_v39, %v461_v40  ;;  %v4244_v31 = vld [vmem:[#allocation8 + $0x1c8] sm:$0xff]   ;;  %v4249_v37 = vld [vmem:[#allocation8 + $0x110] sm:$0xff]  }
 0x196   :  { %v4007_v46 = vcombine.low %v457_v39, %v461_v40  ;;  %v4250_v38 = vld [vmem:[#allocation8 + $0x190] sm:$0xff]   ;;  %v4251_v39 = vld [vmem:[#allocation8 + $0x158] sm:$0xff]  }
 0x197   :  { %v4252_v40 = vld [vmem:[#allocation8 + $0x1d8] sm:$0xff]  }
 0x198   :  { %2746 = vmatpush1.bf16.msra.mxu0 %v3941_v47  ;;  %2869 = vmatpush1.bf16.msra.mxu1 %v3943_v48  ;;  %v4208_v47 = vld [vmem:[#allocation8 + $0xc0] sm:$0xff]  }
 0x199   :  { %2747 = vmatprep.subr.bf16.mxu0 %v3950_v49  ;;  %2870 = vmatprep.subr.bf16.mxu1 %v3952_v50  ;;  %v4209_v48 = vld [vmem:[#allocation8] sm:$0xff]   ;;  %v4211_v50 = vld [vmem:[#allocation8 + $0x48] sm:$0xff]  }
 0x19a   :  { %v4210_v49 = vld [vmem:[#allocation8 + $0x80] sm:$0xff]  }
 0x19c   :  { %2748 = vmatpush1.bf16.msra.mxu0 %v3949_v56  ;;  %2871 = vmatpush1.bf16.msra.mxu1 %v3951_v58  ;;  %v4216_v56 = vld [vmem:[#allocation8 + $0xd0] sm:$0xff]  }
 0x19d   :  { %2749 = vmatprep.subr.bf16.mxu0 %v3958_v59  ;;  %2872 = vmatprep.subr.bf16.mxu1 %v3960_v60  ;;  %v4217_v58 = vld [vmem:[#allocation8 + $0x10] sm:$0xff]   ;;  %v4219_v60 = vld [vmem:[#allocation8 + $0x58] sm:$0xff]  }
 0x19e   :  { %v4218_v59 = vld [vmem:[#allocation8 + $0x90] sm:$0xff]  }
 0x1a0   :  { %2750 = vmatpush1.bf16.msra.mxu0 %v3957_v1  ;;  %2873 = vmatpush1.bf16.msra.mxu1 %v3959_v2  ;;  %v4225_v1 = vld [vmem:[#allocation8 + $0x20] sm:$0xff]  }
 0x1a1   :  { %2751 = vmatprep.subr.bf16.mxu0 %v3966_v12  ;;  %2874 = vmatprep.subr.bf16.mxu1 %v3968_v57  ;;  %v4226_v2 = vld [vmem:[#allocation8 + $0xa0] sm:$0xff]   ;;  %v4227_v12 = vld [vmem:[#allocation8 + $0x68] sm:$0xff]  }
 0x1a2   :  { %v4228_v57 = vld [vmem:[#allocation8 + $0xe8] sm:$0xff]  }
 0x1a4   :  { %2752 = vmatpush1.bf16.msra.mxu0 %v3965_v25  ;;  %2875 = vmatpush1.bf16.msra.mxu1 %v3967_v7  ;;  %v4232_v25 = vld [vmem:[#allocation8 + $0xf0] sm:$0xff]  }
 0x1a5   :  { %2753 = vmatprep.subr.bf16.mxu0 %v3974_v8  ;;  %2876 = vmatprep.subr.bf16.mxu1 %v3976_v9 }
 0x1a8   :  { %2754 = vmatpush1.bf16.msra.mxu0 %v3973_v14  ;;  %2877 = vmatpush1.bf16.msra.mxu1 %v3975_v16 }
 0x1a9   :  { %2755 = vmatprep.subr.bf16.mxu0 %v3982_v32  ;;  %2878 = vmatprep.subr.bf16.mxu1 %v3984_v17  ;;  %v4234_v32 = vld [vmem:[#allocation8 + $0xb0] sm:$0xff]   ;;  %v4235_v17 = vld [vmem:[#allocation8 + $0x78] sm:$0xff]  }
 0x1ac   :  { %2756 = vmatpush1.bf16.msra.mxu0 %v3981_v22  ;;  %2879 = vmatpush1.bf16.msra.mxu1 %v3983_v23  ;;  %v4239_v22 = vld [vmem:[#allocation8 + $0x140] sm:$0xff]  }
 0x1ad   :  { %2757 = vmatprep.subr.bf16.mxu0 %v3990_v26  ;;  %2880 = vmatprep.subr.bf16.mxu1 %v3992_v27  ;;  %v4240_v23 = vld [vmem:[#allocation8 + $0x1c0] sm:$0xff]  }
 0x1ae   :  { %v4241_v26 = vld [vmem:[#allocation8 + $0x100] sm:$0xff]  }
 0x1b0   :  { %2758 = vmatpush1.bf16.msra.mxu0 %v3989_v33  ;;  %2881 = vmatpush1.bf16.msra.mxu1 %v3991_v34  ;;  %v4245_v33 = vld [vmem:[#allocation8 + $0x108] sm:$0xff]  }
 0x1b1   :  { %2759 = vmatprep.subr.bf16.mxu0 %v3998_v15  ;;  %2882 = vmatprep.subr.bf16.mxu1 %v4000_v35  ;;  %v4246_v34 = vld [vmem:[#allocation8 + $0x188] sm:$0xff]   ;;  %v4247_v15 = vld [vmem:[#allocation8 + $0x150] sm:$0xff]  }
 0x1b2   :  { %v4248_v35 = vld [vmem:[#allocation8 + $0x1d0] sm:$0xff]  }
 0x1b4   :  { %2760 = vmatpush1.bf16.msra.mxu0 %v3997_v41  ;;  %2883 = vmatpush1.bf16.msra.mxu1 %v3999_v42  ;;  %v4253_v41 = vld [vmem:[#allocation8 + $0x118] sm:$0xff]  }
 0x1b5   :  { %2761 = vmatprep.subr.bf16.mxu0 %v4006_v43  ;;  %2884 = vmatprep.subr.bf16.mxu1 %v4008_v44  ;;  %v4254_v42 = vld [vmem:[#allocation8 + $0x198] sm:$0xff]   ;;  %v4255_v43 = vld [vmem:[#allocation8 + $0x160] sm:$0xff]  }
 0x1b6   :  { %v4256_v44 = vld [vmem:[#allocation8 + $0x1e0] sm:$0xff]  }
 0x1b8   :  { %2762 = vmatpush1.bf16.msra.mxu0 %v4005_v45  ;;  %2885 = vmatpush1.bf16.msra.mxu1 %v4007_v46  ;;  %v4257_v45 = vld [vmem:[#allocation8 + $0x120] sm:$0xff]  }
 0x1b9   :  { %4073 = vmatprep.subr.bf16.mxu0 %v4207_v24  ;;  %4095 = vmatprep.subr.bf16.mxu1 %v4208_v47  ;;  %v4258_v46 = vld [vmem:[#allocation8 + $0x1a0] sm:$0xff]   ;;  %v4259_v24 = vld [vmem:[#allocation8 + $0x168] sm:$0xff]  }
 0x1ba   :  { %v4260_v47 = vld [vmem:[#allocation8 + $0x1e8] sm:$0xff]  }
 0x1bb   :  { %2764 = vmatmul.mubr.bf16.vlgmr.msra.gmra.mrb[4].mxu0 %v4467_v36  ;;  %2887 = vmatmul.mubr.bf16.vlgmr.msra.gmra.mrb[4].mxu1 %v4467_v36  ;;  %v4222_v36 = vld [vmem:[#allocation8 + $0x98] sm:$0xff]  }
 0x1bc   :  { %4074 = vmatpush3.bf16.msra.mxu0 %v4209_v48  ;;  %4096 = vmatpush3.bf16.msra.mxu1 %v4210_v49  ;;  %v4261_v48 = vld [vmem:[#allocation8 + $0x128] sm:$0xff]  }
 0x1bd   :  { %4075 = vmatprep.subr.bf16.mxu0 %v4211_v50  ;;  %4097 = vmatprep.subr.bf16.mxu1 %v4212_v51  ;;  %v4262_v49 = vld [vmem:[#allocation8 + $0x1a8] sm:$0xff]   ;;  %v4263_v50 = vld [vmem:[#allocation8 + $0x170] sm:$0xff]  }
 0x1be   :  { %v4264_v51 = vld [vmem:[#allocation8 + $0x1f0] sm:$0xff]  }
 0x1c0   :  { %4076 = vmatpush3.bf16.msra.mxu0 %v4213_v52  ;;  %4098 = vmatpush3.bf16.msra.mxu1 %v4214_v54  ;;  %v4265_v52 = vld [vmem:[#allocation8 + $0x130] sm:$0xff]  }
 0x1c1   :  { %4077 = vmatprep.subr.bf16.mxu0 %v4215_v55  ;;  %4099 = vmatprep.subr.bf16.mxu1 %v4216_v56  ;;  %v4266_v54 = vld [vmem:[#allocation8 + $0x1b0] sm:$0xff]   ;;  %v4267_v55 = vld [vmem:[#allocation8 + $0x178] sm:$0xff]  }
 0x1c2   :  { %v4268_v56 = vld [vmem:[#allocation8 + $0x1f8] sm:$0xff]  }
 0x1c4   :  { %4078 = vmatpush3.bf16.msra.mxu0 %v4217_v58  ;;  %4100 = vmatpush3.bf16.msra.mxu1 %v4218_v59  ;;  %v4269_v58 = vld [vmem:[#allocation8 + $0x138] sm:$0xff]  }
 0x1c5   :  { %4079 = vmatprep.subr.bf16.mxu0 %v4219_v60  ;;  %4101 = vmatprep.subr.bf16.mxu1 %v4220_v61  ;;  %v4270_v59 = vld [vmem:[#allocation8 + $0x1b8] sm:$0xff]  }
 0x1c8   :  { %4080 = vmatpush3.bf16.msra.mxu0 %v4221_v62  ;;  %4102 = vmatpush3.bf16.msra.mxu1 %v4222_v36 }
 0x1c9   :  { %4081 = vmatprep.subr.bf16.mxu0 %v4223_v63  ;;  %4103 = vmatprep.subr.bf16.mxu1 %v4224_v0 }
 0x1cc   :  { %4082 = vmatpush3.bf16.msra.mxu0 %v4225_v1  ;;  %4104 = vmatpush3.bf16.msra.mxu1 %v4226_v2 }
 0x1cd   :  { %4083 = vmatprep.subr.bf16.mxu0 %v4227_v12  ;;  %4105 = vmatprep.subr.bf16.mxu1 %v4228_v57 }
 0x1ce   :  { %v2519_v6 = vpop.f32.mrb[0].mxu0  ;;  %v2642_v7 = vpop.f32.mrb[0].mxu1 }
 0x1cf   :  { %v2521_v8 = vpop.f32.mrb[1].mxu0  ;;  %v2644_v10 = vpop.f32.mrb[1].mxu1  ;;  %v2922_v27 = vpack.c.bf16 %v2519_v6, %v2519_v6  ;;  %v2924_v30 = vpack.c.bf16 %v2642_v7, %v2642_v7 }
 0x1d0   :  { %v2923_v9 = vpack.c.bf16 %v2521_v8, %v2521_v8  ;;  %v2523_v53 = vpop.f32.mrb[2].mxu0  ;;  %4084 = vmatpush3.bf16.msra.mxu0 %v4229_v3  ;;  %v2925_v13 = vpack.c.bf16 %v2644_v10, %v2644_v10  ;;  %v2646_v14 = vpop.f32.mrb[2].mxu1  ;;  %4106 = vmatpush3.bf16.msra.mxu1 %v4230_v4 }
 0x1d1   :  { %v2524_v16 = vpop.f32.mrb[3].mxu0  ;;  %4085 = vmatprep.subr.bf16.mxu0 %v4231_v5  ;;  %v2647_v18 = vpop.f32.mrb[3].mxu1  ;;  %4107 = vmatprep.subr.bf16.mxu1 %v4232_v25 }
 0x1d2   :  { %3474 = vmatprep.mubr.bf16.mxu0 %v2923_v9  ;;  %3514 = vmatprep.mubr.bf16.mxu1 %v2925_v13 }
 0x1d4   :  { %4086 = vmatpush3.bf16.msra.mxu0 %v4233_v11  ;;  %4108 = vmatpush3.bf16.msra.mxu1 %v4234_v32 }
 0x1d5   :  { %4087 = vmatprep.subr.bf16.mxu0 %v4235_v17  ;;  %4109 = vmatprep.subr.bf16.mxu1 %v4236_v19 }
 0x1d8   :  { %4088 = vmatpush3.bf16.msra.mxu0 %v4237_v20  ;;  %4110 = vmatpush3.bf16.msra.mxu1 %v4238_v21 }
 0x1d9   :  { %4117 = vmatprep.subr.bf16.mxu0 %v4239_v22  ;;  %4139 = vmatprep.subr.bf16.mxu1 %v4240_v23 }
 0x1db   :  { %3475 = vmatmul.mubr.bf16.vlgmr.msra.gmra.mrb[8].mxu0 %v2922_v27  ;;  %3515 = vmatmul.mubr.bf16.vlgmr.msra.gmra.mrb[8].mxu1 %v2924_v30 }
 0x1dc   :  { %4118 = vmatpush3.bf16.msra.mxu0 %v4241_v26  ;;  %4140 = vmatpush3.bf16.msra.mxu1 %v4242_v28 }
 0x1dd   :  { %4119 = vmatprep.subr.bf16.mxu0 %v4243_v29  ;;  %4141 = vmatprep.subr.bf16.mxu1 %v4244_v31 }
 0x1e0   :  { %4120 = vmatpush3.bf16.msra.mxu0 %v4245_v33  ;;  %4142 = vmatpush3.bf16.msra.mxu1 %v4246_v34 }
 0x1e1   :  { %4121 = vmatprep.subr.bf16.mxu0 %v4247_v15  ;;  %4143 = vmatprep.subr.bf16.mxu1 %v4248_v35 }
 0x1e4   :  { %4122 = vmatpush3.bf16.msra.mxu0 %v4249_v37  ;;  %4144 = vmatpush3.bf16.msra.mxu1 %v4250_v38 }
 0x1e5   :  { %4123 = vmatprep.subr.bf16.mxu0 %v4251_v39  ;;  %4145 = vmatprep.subr.bf16.mxu1 %v4252_v40 }
 0x1e8   :  { %4124 = vmatpush3.bf16.msra.mxu0 %v4253_v41  ;;  %4146 = vmatpush3.bf16.msra.mxu1 %v4254_v42 }
 0x1e9   :  { %4125 = vmatprep.subr.bf16.mxu0 %v4255_v43  ;;  %4147 = vmatprep.subr.bf16.mxu1 %v4256_v44 }
 0x1ec   :  { %4126 = vmatpush3.bf16.msra.mxu0 %v4257_v45  ;;  %4148 = vmatpush3.bf16.msra.mxu1 %v4258_v46 }
 0x1ed   :  { %4127 = vmatprep.subr.bf16.mxu0 %v4259_v24  ;;  %4149 = vmatprep.subr.bf16.mxu1 %v4260_v47 }
 0x1f0   :  { %4128 = vmatpush3.bf16.msra.mxu0 %v4261_v48  ;;  %4150 = vmatpush3.bf16.msra.mxu1 %v4262_v49 }
 0x1f1   :  { %4129 = vmatprep.subr.bf16.mxu0 %v4263_v50  ;;  %4151 = vmatprep.subr.bf16.mxu1 %v4264_v51 }
 0x1f4   :  { %4130 = vmatpush3.bf16.msra.mxu0 %v4265_v52  ;;  %4152 = vmatpush3.bf16.msra.mxu1 %v4266_v54 }
 0x1f5   :  { %4131 = vmatprep.subr.bf16.mxu0 %v4267_v55  ;;  %4153 = vmatprep.subr.bf16.mxu1 %v4268_v56 }
 0x1f8   :  { %4132 = vmatpush3.bf16.msra.mxu0 %v4269_v58  ;;  %4154 = vmatpush3.bf16.msra.mxu1 %v4270_v59 }
 0x28e   :  { %v2765_v60 = vpop.f32.mrb[4].mxu0  ;;  %v2888_v61 = vpop.f32.mrb[4].mxu1 }
 0x28f   :  { %v2767_v62 = vpop.f32.mrb[5].mxu0  ;;  %v2890_v63 = vpop.f32.mrb[5].mxu1  ;;  %v2926_v1 = vpack.c.bf16 %v2765_v60, %v2765_v60  ;;  %v2928_v3 = vpack.c.bf16 %v2888_v61, %v2888_v61 }
 0x290   :  { %v2927_v36 = vpack.c.bf16 %v2767_v62, %v2767_v62  ;;  %v2769_v0 = vpop.f32.mrb[6].mxu0  ;;  %v2929_v2 = vpack.c.bf16 %v2890_v63, %v2890_v63  ;;  %v2892_v12 = vpop.f32.mrb[6].mxu1 }
 0x291   :  { %v2770_v57 = vpop.f32.mrb[7].mxu0  ;;  %v2893_v4 = vpop.f32.mrb[7].mxu1 }
 0x292   :  { %3554 = vmatprep.mubr.bf16.mxu0 %v2927_v36  ;;  %3594 = vmatprep.mubr.bf16.mxu1 %v2929_v2 }
 0x293   :  { %3555 = vmatmul.mubr.bf16.vlgmr.msra.gmra.mrb[12].mxu0 %v2926_v1  ;;  %3595 = vmatmul.mubr.bf16.vlgmr.msra.gmra.mrb[12].mxu1 %v2928_v3 }
 0x2ae   :  { %v4089_v5 = vpop.f32.mrb[8].mxu0  ;;  %v4111_v6 = vpop.f32.mrb[8].mxu1 }
 0x2af   :  { %v4090_v25 = vpop.f32.mrb[9].mxu0  ;;  %v4112_v8 = vpop.f32.mrb[9].mxu1 }
 0x2b0   :  { %v4091_v7 = vadd.f32 %v4090_v25, %v4089_v5  ;;  %v4092_v9 = vpop.f32.mrb[10].mxu0  ;;  %v4113_v10 = vadd.f32 %v4112_v8, %v4111_v6  ;;  %v4114_v53 = vpop.f32.mrb[10].mxu1 }
 0x2b1   :  { %v4093_v11 = vpop.f32.mrb[11].mxu0  ;;  %v4115_v13 = vpop.f32.mrb[11].mxu1 }
 0x2b2   :  { %v3517_v14 = vadd.f32 %v4113_v10, %v4091_v7 }
 0x366   :  { %v4133_v16 = vpop.f32.mrb[12].mxu0  ;;  %v4155_v32 = vpop.f32.mrb[12].mxu1 }
 0x367   :  { %v4134_v17 = vpop.f32.mrb[13].mxu0  ;;  %v4156_v19 = vpop.f32.mrb[13].mxu1 }
 0x368   :  { %v4135_v18 = vadd.f32 %v4134_v17, %v4133_v16  ;;  %v4136_v20 = vpop.f32.mrb[14].mxu0  ;;  %v4157_v21 = vadd.f32 %v4156_v19, %v4155_v32  ;;  %v4158_v22 = vpop.f32.mrb[14].mxu1 }
 0x369   :  { %v4137_v23 = vpop.f32.mrb[15].mxu0  ;;  %v4159_v27 = vpop.f32.mrb[15].mxu1 }
 0x36a   :  { %v3557_v26 = vadd.f32 %v4135_v18, %v3517_v14 }
 0x36c   :  { %v3597_v28 = vadd.f32 %v4157_v21, %v3557_v26 }
 0x36e   :  { %3602 = vst [vmem:[#allocation9] sm:$0xff] %v3597_v28 }
 0x36f   :  { %4348 = shalt.err (!%p4345_p0)
}
 0x370   :  { %s4349_s27 = scalar_lea.hbm %s4498_s3, 128 }
 0x371   :  { %p4350_p1 = scmp.ne.s32.totalorder %s4498_s3, %s4349_s27  ;;  %p4353_p2 = scmp.lt.u32.totalorder %s4349_s27, %s4498_s3 }
 0x373   :  { %p4355_p3 = pnand %p4353_p2, %p4350_p1 }
 0x375   :  { %4358 = shalt.err (!%p4355_p3)
}
 0x376   :  { %3612 = dma.vmem_to_hbm [thread:$0]  %s3610_s23, 128, %s4498_s3, [#allocation5]  }
 0x377   :  { %4363 = dma.done.wait [#allocation5], 128  }
 0x378   :  { %4364 = vsyncadd [#allocation5], 4294967168 }
 0x379   :  { %3616 = vsyncpa [#allocation4], 1 }
 0x37a   :  { %3617 = vsyncpa [#allocation7], 1 }
 0x37b   :  { %3618 = vsyncpa [#allocation5], 1 }

</bundles_post_ra>
